<compile_context>
chip_gen: v7x
topology: tpu7x:2x2x1
jax: 0.10.0
libtpu: 0.0.40
codegen_flags: <defaults>
</compile_context>

<pallas_src>
import functools

import jax
import jax.numpy as jnp
from jax.experimental import pallas as pl
from jax.experimental.pallas import tpu as pltpu


# ---------------------------------------------------------------------------
# helpers
# ---------------------------------------------------------------------------

def _round_up(x, m):
    return (x + m - 1) // m * m


def _choose_node_tiling(n, max_tile):
    """Row tile (multiple of 8) and padded node count Np (multiple of tile)."""
    max_tile = max(8, _round_up(max_tile, 8))
    tile = max_tile if n >= max_tile else _round_up(n, 8)
    return tile, _round_up(n, tile)


# ---------------------------------------------------------------------------
# GCN:  h = PReLU(adj @ (seq @ W^T) + bias)
# ---------------------------------------------------------------------------

def _gcn_linear_kernel(x_ref, w_ref, o_ref):
    # x: (1, TILE, F)   w: (F, H)   o: (1, TILE, H)
    o_ref[0] = jnp.dot(x_ref[0], w_ref[...],
                       preferred_element_type=jnp.float32).astype(o_ref.dtype)


def _gcn_aggregate_kernel(adj_ref, fts_ref, b_ref, a_ref, o_ref):
    # adj: (1, TILE, Np)  fts: (1, Np, H)  b: (1, H)  a: (1, 1)  o: (1, TILE, H)
    out = jnp.dot(adj_ref[0], fts_ref[0],
                  preferred_element_type=jnp.float32) + b_ref[...]
    # PReLU with a single learnable slope (torch default num_parameters=1)
    o_ref[0] = jnp.where(out >= 0.0, out, out * a_ref[...]).astype(o_ref.dtype)


def _gcn_forward(seq, adj, w, b, alpha, *, tile, compute_dtype):
    B, Np, F = seq.shape
    H = w.shape[0]                       # torch Linear weight is (out_ft, in_ft)
    cdt = compute_dtype
    grid = (B, Np // tile)
    par = pltpu.CompilerParams(dimension_semantics=("parallel", "parallel"))

    # seq @ W^T : seq rows stream, W^T stays resident.
    fts = pl.pallas_call(
        _gcn_linear_kernel,
        out_shape=jax.ShapeDtypeStruct((B, Np, H), cdt),
        grid=grid,
        in_specs=[
            pl.BlockSpec((1, tile, F), lambda bi, i: (bi, i, 0)),
            pl.BlockSpec((F, H), lambda bi, i: (0, 0)),
        ],
        out_specs=pl.BlockSpec((1, tile, H), lambda bi, i: (bi, i, 0)),
        compiler_params=par,
    )(seq.astype(cdt), w.T.astype(cdt))

    # adj @ fts + bias, PReLU : adj rows stream, fts/bias/alpha resident.
    # NOTE: the Np contraction axis is un-tiled (fits VMEM for MVGRL-sized
    # graphs); for very large graphs add a K grid axis + f32 accumulator.
    h = pl.pallas_call(
        _gcn_aggregate_kernel,
        out_shape=jax.ShapeDtypeStruct((B, Np, H), jnp.float32),
        grid=grid,
        in_specs=[
            pl.BlockSpec((1, tile, Np), lambda bi, i: (bi, i, 0)),
            pl.BlockSpec((1, Np, H), lambda bi, i: (bi, 0, 0)),
            pl.BlockSpec((1, H), lambda bi, i: (0, 0)),
            pl.BlockSpec((1, 1), lambda bi, i: (0, 0)),
        ],
        out_specs=pl.BlockSpec((1, tile, H), lambda bi, i: (bi, i, 0)),
        compiler_params=par,
    )(adj.astype(cdt), fts, b.reshape(1, H).astype(jnp.float32),
      alpha.reshape(1, 1).astype(jnp.float32))
    return h


# ---------------------------------------------------------------------------
# Readout (msk=None) + Sigmoid:  c = sigmoid(mean_n h)
# ---------------------------------------------------------------------------

def _readout_sigmoid_kernel(h_ref, o_ref, acc_ref, *, n_valid, tile):
    i = pl.program_id(1)

    @pl.when(i == 0)
    def _():
        acc_ref[...] = jnp.zeros_like(acc_ref)

    # mask padded rows (global row index >= true N)
    rows = i * tile + jax.lax.broadcasted_iota(jnp.int32, (tile, 1), 0)
    hv = jnp.where(rows < n_valid, h_ref[0].astype(jnp.float32), 0.0)
    acc_ref[...] += jnp.sum(hv, axis=0, keepdims=True)

    @pl.when(i == pl.num_programs(1) - 1)
    def _():
        o_ref[0] = jax.nn.sigmoid(acc_ref[...] * (1.0 / n_valid)).astype(o_ref.dtype)


def _readout_sigmoid(h, *, n_valid, tile):
    B, Np, H = h.shape
    return pl.pallas_call(
        functools.partial(_readout_sigmoid_kernel, n_valid=n_valid, tile=tile),
        out_shape=jax.ShapeDtypeStruct((B, 1, H), jnp.float32),
        grid=(B, Np // tile),
        in_specs=[pl.BlockSpec((1, tile, H), lambda bi, i: (bi, i, 0))],
        out_specs=pl.BlockSpec((1, 1, H), lambda bi, i: (bi, 0, 0)),
        scratch_shapes=[pltpu.VMEM((1, H), jnp.float32)],
        compiler_params=pltpu.CompilerParams(
            dimension_semantics=("parallel", "arbitrary")),
    )(h)


# ---------------------------------------------------------------------------
# Discriminator:  sc_j[n] = h_x[n, :] @ W0 @ c_y + bias
# ---------------------------------------------------------------------------

def _disc_kernel(h1_ref, h2_ref, h3_ref, h4_ref, c1_ref, c2_ref, w_ref, b_ref,
                 o_ref, v_scr):
    i = pl.program_id(1)

    @pl.when(i == 0)
    def _():
        # v_k = W0 @ c_k  (c stored as a (1, H) row): v[0, m] = sum_j c[0, j] W0[m, j]
        dn = (((1,), (1,)), ((), ()))
        v_scr[0:1, :] = jax.lax.dot_general(
            c1_ref[0], w_ref[...], dn, preferred_element_type=jnp.float32)
        v_scr[1:2, :] = jax.lax.dot_general(
            c2_ref[0], w_ref[...], dn, preferred_element_type=jnp.float32)

    v1 = v_scr[0:1, :]
    v2 = v_scr[1:2, :]
    s1 = jnp.sum(h2_ref[0] * v1, axis=-1, keepdims=True)   # f_k(h2, c1)
    s2 = jnp.sum(h1_ref[0] * v2, axis=-1, keepdims=True)   # f_k(h1, c2)
    s3 = jnp.sum(h4_ref[0] * v1, axis=-1, keepdims=True)   # f_k(h4, c1)
    s4 = jnp.sum(h3_ref[0] * v2, axis=-1, keepdims=True)   # f_k(h3, c2)
    o_ref[0] = (jnp.concatenate([s1, s2, s3, s4], axis=-1)
                + b_ref[...]).astype(o_ref.dtype)


def _discriminator(h1, h2, h3, h4, c1, c2, w0, bias, *, tile):
    B, Np, H = h1.shape
    row_spec = pl.BlockSpec((1, tile, H), lambda bi, i: (bi, i, 0))
    c_spec = pl.BlockSpec((1, 1, H), lambda bi, i: (bi, 0, 0))
    return pl.pallas_call(
        _disc_kernel,
        out_shape=jax.ShapeDtypeStruct((B, Np, 4), jnp.float32),
        grid=(B, Np // tile),
        in_specs=[row_spec, row_spec, row_spec, row_spec, c_spec, c_spec,
                  pl.BlockSpec((H, H), lambda bi, i: (0, 0)),
                  pl.BlockSpec((1, 1), lambda bi, i: (0, 0))],
        out_specs=pl.BlockSpec((1, tile, 4), lambda bi, i: (bi, i, 0)),
        scratch_shapes=[pltpu.VMEM((2, H), jnp.float32)],
        compiler_params=pltpu.CompilerParams(
            dimension_semantics=("parallel", "arbitrary")),
    )(h1, h2, h3, h4, c1, c2, w0, bias.reshape(1, 1).astype(jnp.float32))


# ---------------------------------------------------------------------------
# Model.forward
# ---------------------------------------------------------------------------

def mvgrl_forward(params, seq1, seq2, adj, diff, sparse=False, msk=None,
                  samp_bias1=None, samp_bias2=None, *,
                  tile_n=256, compute_dtype=jnp.float32):
    """Pallas implementation of Model.forward (dense path, msk=None)."""
    del samp_bias1, samp_bias2  # accepted but unused by Discriminator.forward
    if sparse:
        # TODO(synk): sparse=True (torch.spmm) path not implemented; dense bmm only.
        raise NotImplementedError("sparse adjacency path not implemented")
    if msk is not None:
        # TODO(synk): masked Readout (msk != None) not implemented; train_node.py passes msk=None.
        raise NotImplementedError("msk is not supported")

    B, N, _ = seq1.shape
    tile, Np = _choose_node_tiling(N, tile_n)
    pad = Np - N
    if pad:
        seq1 = jnp.pad(seq1, ((0, 0), (0, pad), (0, 0)))
        seq2 = jnp.pad(seq2, ((0, 0), (0, pad), (0, 0)))
        adj = jnp.pad(adj, ((0, 0), (0, pad), (0, pad)))
        diff = jnp.pad(diff, ((0, 0), (0, pad), (0, pad)))

    gcn = functools.partial(_gcn_forward, tile=tile, compute_dtype=compute_dtype)
    h1 = gcn(seq1, adj, params["gcn1_w"], params["gcn1_b"], params["gcn1_a"])
    h2 = gcn(seq1, diff, params["gcn2_w"], params["gcn2_b"], params["gcn2_a"])
    h3 = gcn(seq2, adj, params["gcn1_w"], params["gcn1_b"], params["gcn1_a"])
    h4 = gcn(seq2, diff, params["gcn2_w"], params["gcn2_b"], params["gcn2_a"])

    c1 = _readout_sigmoid(h1, n_valid=N, tile=tile)   # (B, 1, H)
    c2 = _readout_sigmoid(h2, n_valid=N, tile=tile)

    scores = _discriminator(h1, h2, h3, h4, c1, c2,
                            params["disc_w"], params["disc_b"], tile=tile)
    # columns are (sc_1, sc_2, sc_3, sc_4); match torch.cat((sc_1..sc_4), dim=1)
    logits = scores[:, :N, :].transpose(0, 2, 1).reshape(B, 4 * N)
    return logits, h1[:, :N, :], h2[:, :N, :]


# ---------------------------------------------------------------------------
# params + pure-JAX reference
# ---------------------------------------------------------------------------

def init_model_params(key, n_in, n_h, dtype=jnp.float32):
    k1, k2, k3 = jax.random.split(key, 3)

    def xavier(k, shape, fan_in, fan_out):
        bound = (6.0 / (fan_in + fan_out)) ** 0.5
        return jax.random.uniform(k, shape, minval=-bound, maxval=bound, dtype=dtype)

    return {
        "gcn1_w": xavier(k1, (n_h, n_in), n_in, n_h),
        "gcn1_b": jnp.zeros((n_h,), dtype),
        "gcn1_a": jnp.full((1,), 0.25, dtype),          # PReLU slope
        "gcn2_w": xavier(k2, (n_h, n_in), n_in, n_h),
        "gcn2_b": jnp.zeros((n_h,), dtype),
        "gcn2_a": jnp.full((1,), 0.25, dtype),
        "disc_w": xavier(k3, (n_h, n_h), n_h, n_h),     # Bilinear weight[0]
        "disc_b": jnp.zeros((1,), dtype),
    }


def _reference_forward(params, seq1, seq2, adj, diff):
    P = jax.lax.Precision.HIGHEST

    def gcn(seq, a, w, b, al):
        fts = jnp.einsum("bnf,hf->bnh", seq, w, precision=P)
        out = jnp.einsum("bnm,bmh->bnh", a, fts, precision=P) + b
        return jnp.where(out >= 0.0, out, al[0] * out)

    h1 = gcn(seq1, adj, params["gcn1_w"], params["gcn1_b"], params["gcn1_a"])
    h2 = gcn(seq1, diff, params["gcn2_w"], params["gcn2_b"], params["gcn2_a"])
    h3 = gcn(seq2, adj, params["gcn1_w"], params["gcn1_b"], params["gcn1_a"])
    h4 = gcn(seq2, diff, params["gcn2_w"], params["gcn2_b"], params["gcn2_a"])
    c1 = jax.nn.sigmoid(jnp.mean(h1, axis=1))
    c2 = jax.nn.sigmoid(jnp.mean(h2, axis=1))
    W0, bb = params["disc_w"], params["disc_b"][0]

    def bil(x, c):
        return jnp.einsum("bnh,hk,bk->bn", x, W0, c, precision=P) + bb

    logits = jnp.concatenate(
        [bil(h2, c1), bil(h1, c2), bil(h4, c1), bil(h3, c2)], axis=1)
    return logits, h1, h2


# ---------------------------------------------------------------------------

if __name__ == "__main__":
    key = jax.random.PRNGKey(0)
    kp, k1, k2, k3, k4 = jax.random.split(key, 5)

    B, N, n_in, n_h = 1, 256, 64, 32
    params = init_model_params(kp, n_in, n_h)
    seq1 = jax.random.normal(k1, (B, N, n_in), jnp.float32)
    seq2 = jax.random.normal(k2, (B, N, n_in), jnp.float32)
    adj = jax.random.uniform(k3, (B, N, N), jnp.float32)
    adj = adj / jnp.sum(adj, axis=-1, keepdims=True)
    diff = jax.random.uniform(k4, (B, N, N), jnp.float32)
    diff = diff / jnp.sum(diff, axis=-1, keepdims=True)

    fwd = jax.jit(lambda p, s1, s2, a, d: mvgrl_forward(p, s1, s2, a, d, tile_n=128))
    logits, h1, h2 = fwd(params, seq1, seq2, adj, diff)
    jax.block_until_ready((logits, h1, h2))

    ref_logits, ref_h1, ref_h2 = _reference_forward(params, seq1, seq2, adj, diff)
    assert logits.shape == (B, 4 * N)
    assert h1.shape == (B, N, n_h) and h2.shape == (B, N, n_h)
    assert jnp.allclose(h1, ref_h1, atol=2e-4, rtol=2e-3)
    assert jnp.allclose(h2, ref_h2, atol=2e-4, rtol=2e-3)
    assert jnp.allclose(logits, ref_logits, atol=1e-3, rtol=2e-3)

    print("KERNEL_OK")
</pallas_src>

<mosaic_0001>
module attributes {stable_mosaic.version = 11 : i64} {
  func.func @_gcn_linear_kernel(%arg0: i32, %arg1: i32, %arg2: memref<1x128x64xf32, #tpu.memory_space<vmem>>, %arg3: memref<64x32xf32, #tpu.memory_space<vmem>>, %arg4: memref<1x128x32xf32, #tpu.memory_space<vmem>>) attributes {dimension_semantics = [#tpu.dimension_semantics<parallel>, #tpu.dimension_semantics<parallel>], iteration_bounds = array<i64: 1, 2>, scalar_prefetch = 0 : i64, scratch_operands = 0 : i64, tpu.core_type = #tpu.core_type<tc>, window_params = [{transform_indices = @transform_0, window_bounds = array<i64: 1, 128, 64>}, {pipeline_mode = #tpu.pipeline_mode<synchronous>, transform_indices = @transform_1, window_bounds = array<i64: 64, 32>}, {transform_indices = @transform_2, window_bounds = array<i64: 1, 128, 32>}]} {
    %c0 = arith.constant 0 : index
    %c0_0 = arith.constant 0 : index
    %c0_1 = arith.constant 0 : index
    %0 = vector.load %arg2[%c0, %c0_0, %c0_1] : memref<1x128x64xf32, #tpu.memory_space<vmem>>, vector<1x128x64xf32>
    %1 = vector.shape_cast %0 : vector<1x128x64xf32> to vector<128x64xf32>
    %c0_2 = arith.constant 0 : index
    %c0_3 = arith.constant 0 : index
    %2 = vector.load %arg3[%c0_2, %c0_3] : memref<64x32xf32, #tpu.memory_space<vmem>>, vector<64x32xf32>
    %cst = arith.constant dense<0.000000e+00> : vector<128x32xf32>
    %3 = tpu.matmul %1, %2, %cst {dimension_numbers = #tpu.dot_dimension_numbers<[1], [0], [0], [1], [0, 0, 1, 1], [], []>} : vector<128x64xf32>, vector<64x32xf32>, vector<128x32xf32> -> vector<128x32xf32>
    %c0_4 = arith.constant 0 : index
    %c0_5 = arith.constant 0 : index
    %c0_6 = arith.constant 0 : index
    %4 = vector.load %arg4[%c0_4, %c0_5, %c0_6] : memref<1x128x32xf32, #tpu.memory_space<vmem>>, vector<1x128x32xf32>
    %5 = vector.shape_cast %4 : vector<1x128x32xf32> to vector<128x32xf32>
    %6 = vector.shape_cast %3 : vector<128x32xf32> to vector<1x128x32xf32>
    tpu.vector_store %arg4[%c0_4, %c0_5, %c0_6], %6 {strides = array<i32>} : memref<1x128x32xf32, #tpu.memory_space<vmem>>, vector<1x128x32xf32>,
    return
  }
  func.func @transform_0(%arg0: i32, %arg1: i32) -> (i32, i32, i32) {
    %c0_i32 = arith.constant 0 : i32
    %c0_i32_0 = arith.constant 0 : i32
    return %arg0, %arg1, %c0_i32 : i32, i32, i32
  }
  func.func @transform_1(%arg0: i32, %arg1: i32) -> (i32, i32) {
    %c0_i32 = arith.constant 0 : i32
    %c0_i32_0 = arith.constant 0 : i32
    %c0_i32_1 = arith.constant 0 : i32
    return %c0_i32, %c0_i32_0 : i32, i32
  }
  func.func @transform_2(%arg0: i32, %arg1: i32) -> (i32, i32, i32) {
    %c0_i32 = arith.constant 0 : i32
    %c0_i32_0 = arith.constant 0 : i32
    return %arg0, %arg1, %c0_i32 : i32, i32, i32
  }
}

module attributes {stable_mosaic.version = 11 : i64} {
  func.func @_gcn_aggregate_kernel(%arg0: i32, %arg1: i32, %arg2: memref<1x128x256xf32, #tpu.memory_space<vmem>>, %arg3: memref<1x256x32xf32, #tpu.memory_space<vmem>>, %arg4: memref<1x32xf32, #tpu.memory_space<vmem>>, %arg5: memref<1x1xf32, #tpu.memory_space<vmem>>, %arg6: memref<1x128x32xf32, #tpu.memory_space<vmem>>) attributes {dimension_semantics = [#tpu.dimension_semantics<parallel>, #tpu.dimension_semantics<parallel>], iteration_bounds = array<i64: 1, 2>, scalar_prefetch = 0 : i64, scratch_operands = 0 : i64, tpu.core_type = #tpu.core_type<tc>, window_params = [{transform_indices = @transform_0, window_bounds = array<i64: 1, 128, 256>}, {transform_indices = @transform_1, window_bounds = array<i64: 1, 256, 32>}, {pipeline_mode = #tpu.pipeline_mode<synchronous>, transform_indices = @transform_2, window_bounds = array<i64: 1, 32>}, {pipeline_mode = #tpu.pipeline_mode<synchronous>, transform_indices = @transform_3, window_bounds = array<i64: 1, 1>}, {transform_indices = @transform_4, window_bounds = array<i64: 1, 128, 32>}]} {
    %c0 = arith.constant 0 : index
    %c0_0 = arith.constant 0 : index
    %c0_1 = arith.constant 0 : index
    %0 = vector.load %arg2[%c0, %c0_0, %c0_1] : memref<1x128x256xf32, #tpu.memory_space<vmem>>, vector<1x128x256xf32>
    %1 = vector.shape_cast %0 : vector<1x128x256xf32> to vector<128x256xf32>
    %c0_2 = arith.constant 0 : index
    %c0_3 = arith.constant 0 : index
    %c0_4 = arith.constant 0 : index
    %2 = vector.load %arg3[%c0_2, %c0_3, %c0_4] : memref<1x256x32xf32, #tpu.memory_space<vmem>>, vector<1x256x32xf32>
    %3 = vector.shape_cast %2 : vector<1x256x32xf32> to vector<256x32xf32>
    %cst = arith.constant dense<0.000000e+00> : vector<128x32xf32>
    %4 = tpu.matmul %1, %3, %cst {dimension_numbers = #tpu.dot_dimension_numbers<[1], [0], [0], [1], [0, 0, 1, 1], [], []>} : vector<128x256xf32>, vector<256x32xf32>, vector<128x32xf32> -> vector<128x32xf32>
    %c0_5 = arith.constant 0 : index
    %c0_6 = arith.constant 0 : index
    %5 = vector.load %arg4[%c0_5, %c0_6] : memref<1x32xf32, #tpu.memory_space<vmem>>, vector<1x32xf32>
    %6 = vector.broadcast %5 : vector<1x32xf32> to vector<128x32xf32>
    %7 = arith.addf %4, %6 : vector<128x32xf32>
    %cst_7 = arith.constant 0.000000e+00 : f32
    %8 = vector.broadcast %cst_7 : f32 to vector<128x32xf32>
    %9 = arith.cmpf oge, %7, %8 : vector<128x32xf32>
    %c0_8 = arith.constant 0 : index
    %c0_9 = arith.constant 0 : index
    %10 = vector.load %arg5[%c0_8, %c0_9] : memref<1x1xf32, #tpu.memory_space<vmem>>, vector<1x1xf32>
    %11 = vector.broadcast %10 : vector<1x1xf32> to vector<128x32xf32>
    %12 = arith.mulf %7, %11 : vector<128x32xf32>
    %13 = arith.select %9, %7, %12 : vector<128x32xi1>, vector<128x32xf32>
    %c0_10 = arith.constant 0 : index
    %c0_11 = arith.constant 0 : index
    %c0_12 = arith.constant 0 : index
    %14 = vector.load %arg6[%c0_10, %c0_11, %c0_12] : memref<1x128x32xf32, #tpu.memory_space<vmem>>, vector<1x128x32xf32>
    %15 = vector.shape_cast %14 : vector<1x128x32xf32> to vector<128x32xf32>
    %16 = vector.shape_cast %13 : vector<128x32xf32> to vector<1x128x32xf32>
    tpu.vector_store %arg6[%c0_10, %c0_11, %c0_12], %16 {strides = array<i32>} : memref<1x128x32xf32, #tpu.memory_space<vmem>>, vector<1x128x32xf32>,
    return
  }
  func.func @transform_0(%arg0: i32, %arg1: i32) -> (i32, i32, i32) {
    %c0_i32 = arith.constant 0 : i32
    %c0_i32_0 = arith.constant 0 : i32
    return %arg0, %arg1, %c0_i32 : i32, i32, i32
  }
  func.func @transform_1(%arg0: i32, %arg1: i32) -> (i32, i32, i32) {
    %c0_i32 = arith.constant 0 : i32
    %c0_i32_0 = arith.constant 0 : i32
    %c0_i32_1 = arith.constant 0 : i32
    return %arg0, %c0_i32, %c0_i32_0 : i32, i32, i32
  }
  func.func @transform_2(%arg0: i32, %arg1: i32) -> (i32, i32) {
    %c0_i32 = arith.constant 0 : i32
    %c0_i32_0 = arith.constant 0 : i32
    %c0_i32_1 = arith.constant 0 : i32
    return %c0_i32, %c0_i32_0 : i32, i32
  }
  func.func @transform_3(%arg0: i32, %arg1: i32) -> (i32, i32) {
    %c0_i32 = arith.constant 0 : i32
    %c0_i32_0 = arith.constant 0 : i32
    %c0_i32_1 = arith.constant 0 : i32
    return %c0_i32, %c0_i32_0 : i32, i32
  }
  func.func @transform_4(%arg0: i32, %arg1: i32) -> (i32, i32, i32) {
    %c0_i32 = arith.constant 0 : i32
    %c0_i32_0 = arith.constant 0 : i32
    return %arg0, %arg1, %c0_i32 : i32, i32, i32
  }
}

module attributes {stable_mosaic.version = 11 : i64} {
  func.func @_disc_kernel(%arg0: i32, %arg1: i32, %arg2: memref<1x128x32xf32, #tpu.memory_space<vmem>>, %arg3: memref<1x128x32xf32, #tpu.memory_space<vmem>>, %arg4: memref<1x128x32xf32, #tpu.memory_space<vmem>>, %arg5: memref<1x128x32xf32, #tpu.memory_space<vmem>>, %arg6: memref<1x1x32xf32, #tpu.memory_space<vmem>>, %arg7: memref<1x1x32xf32, #tpu.memory_space<vmem>>, %arg8: memref<32x32xf32, #tpu.memory_space<vmem>>, %arg9: memref<1x1xf32, #tpu.memory_space<vmem>>, %arg10: memref<1x128x4xf32, #tpu.memory_space<vmem>>, %arg11: memref<2x32xf32, #tpu.memory_space<vmem>>) attributes {dimension_semantics = [#tpu.dimension_semantics<parallel>, #tpu.dimension_semantics<arbitrary>], iteration_bounds = array<i64: 1, 2>, scalar_prefetch = 0 : i64, scratch_operands = 1 : i64, tpu.core_type = #tpu.core_type<tc>, window_params = [{transform_indices = @transform_0, window_bounds = array<i64: 1, 128, 32>}, {transform_indices = @transform_1, window_bounds = array<i64: 1, 128, 32>}, {transform_indices = @transform_2, window_bounds = array<i64: 1, 128, 32>}, {transform_indices = @transform_3, window_bounds = array<i64: 1, 128, 32>}, {transform_indices = @transform_4, window_bounds = array<i64: 1, 1, 32>}, {transform_indices = @transform_5, window_bounds = array<i64: 1, 1, 32>}, {pipeline_mode = #tpu.pipeline_mode<synchronous>, transform_indices = @transform_6, window_bounds = array<i64: 32, 32>}, {pipeline_mode = #tpu.pipeline_mode<synchronous>, transform_indices = @transform_7, window_bounds = array<i64: 1, 1>}, {transform_indices = @transform_8, window_bounds = array<i64: 1, 128, 4>}]} {
    %c0_i32 = arith.constant 0 : i32
    %0 = arith.cmpi eq, %arg1, %c0_i32 : i32
    %1 = arith.extui %0 : i1 to i32
    %c0_i32_0 = arith.constant 0 : i32
    %2 = arith.cmpi ne, %1, %c0_i32_0 : i32
    scf.if %2 {
      %c0_23 = arith.constant 0 : index
      %c0_24 = arith.constant 0 : index
      %c0_25 = arith.constant 0 : index
      %36 = vector.load %arg6[%c0_23, %c0_24, %c0_25] : memref<1x1x32xf32, #tpu.memory_space<vmem>>, vector<1x1x32xf32>
      %37 = vector.shape_cast %36 : vector<1x1x32xf32> to vector<1x32xf32>
      %c0_26 = arith.constant 0 : index
      %c0_27 = arith.constant 0 : index
      %38 = vector.load %arg8[%c0_26, %c0_27] : memref<32x32xf32, #tpu.memory_space<vmem>>, vector<32x32xf32>
      %cst_28 = arith.constant dense<0.000000e+00> : vector<1x32xf32>
      %39 = tpu.matmul %37, %38, %cst_28 {dimension_numbers = #tpu.dot_dimension_numbers<[1], [1], [0], [0], [0, 0, 1, 0], [], []>} : vector<1x32xf32>, vector<32x32xf32>, vector<1x32xf32> -> vector<1x32xf32>
      %c0_29 = arith.constant 0 : index
      %c0_30 = arith.constant 0 : index
      %40 = vector.load %arg11[%c0_29, %c0_30] : memref<2x32xf32, #tpu.memory_space<vmem>>, vector<1x32xf32>
      tpu.vector_store %arg11[%c0_29, %c0_30], %39 {strides = array<i32>} : memref<2x32xf32, #tpu.memory_space<vmem>>, vector<1x32xf32>,
      %c0_31 = arith.constant 0 : index
      %c0_32 = arith.constant 0 : index
      %c0_33 = arith.constant 0 : index
      %41 = vector.load %arg7[%c0_31, %c0_32, %c0_33] : memref<1x1x32xf32, #tpu.memory_space<vmem>>, vector<1x1x32xf32>
      %42 = vector.shape_cast %41 : vector<1x1x32xf32> to vector<1x32xf32>
      %c0_34 = arith.constant 0 : index
      %c0_35 = arith.constant 0 : index
      %43 = vector.load %arg8[%c0_34, %c0_35] : memref<32x32xf32, #tpu.memory_space<vmem>>, vector<32x32xf32>
      %cst_36 = arith.constant dense<0.000000e+00> : vector<1x32xf32>
      %44 = tpu.matmul %42, %43, %cst_36 {dimension_numbers = #tpu.dot_dimension_numbers<[1], [1], [0], [0], [0, 0, 1, 0], [], []>} : vector<1x32xf32>, vector<32x32xf32>, vector<1x32xf32> -> vector<1x32xf32>
      %c1_37 = arith.constant 1 : index
      %c0_38 = arith.constant 0 : index
      %45 = vector.load %arg11[%c1_37, %c0_38] : memref<2x32xf32, #tpu.memory_space<vmem>>, vector<1x32xf32>
      tpu.vector_store %arg11[%c1_37, %c0_38], %44 {strides = array<i32>} : memref<2x32xf32, #tpu.memory_space<vmem>>, vector<1x32xf32>,
    } else {
    }
    %c0 = arith.constant 0 : index
    %c0_1 = arith.constant 0 : index
    %3 = vector.load %arg11[%c0, %c0_1] : memref<2x32xf32, #tpu.memory_space<vmem>>, vector<1x32xf32>
    %c1 = arith.constant 1 : index
    %c0_2 = arith.constant 0 : index
    %4 = vector.load %arg11[%c1, %c0_2] : memref<2x32xf32, #tpu.memory_space<vmem>>, vector<1x32xf32>
    %c0_3 = arith.constant 0 : index
    %c0_4 = arith.constant 0 : index
    %c0_5 = arith.constant 0 : index
    %5 = vector.load %arg3[%c0_3, %c0_4, %c0_5] : memref<1x128x32xf32, #tpu.memory_space<vmem>>, vector<1x128x32xf32>
    %6 = vector.shape_cast %5 : vector<1x128x32xf32> to vector<128x32xf32>
    %7 = vector.broadcast %3 : vector<1x32xf32> to vector<128x32xf32>
    %8 = arith.mulf %6, %7 : vector<128x32xf32>
    %cst = arith.constant dense<0.000000e+00> : vector<128xf32>
    %9 = vector.multi_reduction <add>, %8, %cst [1] : vector<128x32xf32> to vector<128xf32>
    %10 = vector.shape_cast %9 : vector<128xf32> to vector<128x1xf32>
    %c0_6 = arith.constant 0 : index
    %c0_7 = arith.constant 0 : index
    %c0_8 = arith.constant 0 : index
    %11 = vector.load %arg2[%c0_6, %c0_7, %c0_8] : memref<1x128x32xf32, #tpu.memory_space<vmem>>, vector<1x128x32xf32>
    %12 = vector.shape_cast %11 : vector<1x128x32xf32> to vector<128x32xf32>
    %13 = vector.broadcast %4 : vector<1x32xf32> to vector<128x32xf32>
    %14 = arith.mulf %12, %13 : vector<128x32xf32>
    %cst_9 = arith.constant dense<0.000000e+00> : vector<128xf32>
    %15 = vector.multi_reduction <add>, %14, %cst_9 [1] : vector<128x32xf32> to vector<128xf32>
    %16 = vector.shape_cast %15 : vector<128xf32> to vector<128x1xf32>
    %c0_10 = arith.constant 0 : index
    %c0_11 = arith.constant 0 : index
    %c0_12 = arith.constant 0 : index
    %17 = vector.load %arg5[%c0_10, %c0_11, %c0_12] : memref<1x128x32xf32, #tpu.memory_space<vmem>>, vector<1x128x32xf32>
    %18 = vector.shape_cast %17 : vector<1x128x32xf32> to vector<128x32xf32>
    %19 = vector.broadcast %3 : vector<1x32xf32> to vector<128x32xf32>
    %20 = arith.mulf %18, %19 : vector<128x32xf32>
    %cst_13 = arith.constant dense<0.000000e+00> : vector<128xf32>
    %21 = vector.multi_reduction <add>, %20, %cst_13 [1] : vector<128x32xf32> to vector<128xf32>
    %22 = vector.shape_cast %21 : vector<128xf32> to vector<128x1xf32>
    %c0_14 = arith.constant 0 : index
    %c0_15 = arith.constant 0 : index
    %c0_16 = arith.constant 0 : index
    %23 = vector.load %arg4[%c0_14, %c0_15, %c0_16] : memref<1x128x32xf32, #tpu.memory_space<vmem>>, vector<1x128x32xf32>
    %24 = vector.shape_cast %23 : vector<1x128x32xf32> to vector<128x32xf32>
    %25 = vector.broadcast %4 : vector<1x32xf32> to vector<128x32xf32>
    %26 = arith.mulf %24, %25 : vector<128x32xf32>
    %cst_17 = arith.constant dense<0.000000e+00> : vector<128xf32>
    %27 = vector.multi_reduction <add>, %26, %cst_17 [1] : vector<128x32xf32> to vector<128xf32>
    %28 = vector.shape_cast %27 : vector<128xf32> to vector<128x1xf32>
    %29 = tpu.concatenate %10, %16, %22, %28 in 1 : vector<128x1xf32>, vector<128x1xf32>, vector<128x1xf32>, vector<128x1xf32> -> vector<128x4xf32>
    %c0_18 = arith.constant 0 : index
    %c0_19 = arith.constant 0 : index
    %30 = vector.load %arg9[%c0_18, %c0_19] : memref<1x1xf32, #tpu.memory_space<vmem>>, vector<1x1xf32>
    %31 = vector.broadcast %30 : vector<1x1xf32> to vector<128x4xf32>
    %32 = arith.addf %29, %31 : vector<128x4xf32>
    %c0_20 = arith.constant 0 : index
    %c0_21 = arith.constant 0 : index
    %c0_22 = arith.constant 0 : index
    %33 = vector.load %arg10[%c0_20, %c0_21, %c0_22] : memref<1x128x4xf32, #tpu.memory_space<vmem>>, vector<1x128x4xf32>
    %34 = vector.shape_cast %33 : vector<1x128x4xf32> to vector<128x4xf32>
    %35 = vector.shape_cast %32 : vector<128x4xf32> to vector<1x128x4xf32>
    tpu.vector_store %arg10[%c0_20, %c0_21, %c0_22], %35 {strides = array<i32>} : memref<1x128x4xf32, #tpu.memory_space<vmem>>, vector<1x128x4xf32>,
    return
  }
  func.func @transform_0(%arg0: i32, %arg1: i32) -> (i32, i32, i32) {
    %c0_i32 = arith.constant 0 : i32
    %c0_i32_0 = arith.constant 0 : i32
    return %arg0, %arg1, %c0_i32 : i32, i32, i32
  }
  func.func @transform_1(%arg0: i32, %arg1: i32) -> (i32, i32, i32) {
    %c0_i32 = arith.constant 0 : i32
    %c0_i32_0 = arith.constant 0 : i32
    return %arg0, %arg1, %c0_i32 : i32, i32, i32
  }
  func.func @transform_2(%arg0: i32, %arg1: i32) -> (i32, i32, i32) {
    %c0_i32 = arith.constant 0 : i32
    %c0_i32_0 = arith.constant 0 : i32
    return %arg0, %arg1, %c0_i32 : i32, i32, i32
  }
  func.func @transform_3(%arg0: i32, %arg1: i32) -> (i32, i32, i32) {
    %c0_i32 = arith.constant 0 : i32
    %c0_i32_0 = arith.constant 0 : i32
    return %arg0, %arg1, %c0_i32 : i32, i32, i32
  }
  func.func @transform_4(%arg0: i32, %arg1: i32) -> (i32, i32, i32) {
    %c0_i32 = arith.constant 0 : i32
    %c0_i32_0 = arith.constant 0 : i32
    %c0_i32_1 = arith.constant 0 : i32
    return %arg0, %c0_i32, %c0_i32_0 : i32, i32, i32
  }
  func.func @transform_5(%arg0: i32, %arg1: i32) -> (i32, i32, i32) {
    %c0_i32 = arith.constant 0 : i32
    %c0_i32_0 = arith.constant 0 : i32
    %c0_i32_1 = arith.constant 0 : i32
    return %arg0, %c0_i32, %c0_i32_0 : i32, i32, i32
  }
  func.func @transform_6(%arg0: i32, %arg1: i32) -> (i32, i32) {
    %c0_i32 = arith.constant 0 : i32
    %c0_i32_0 = arith.constant 0 : i32
    %c0_i32_1 = arith.constant 0 : i32
    return %c0_i32, %c0_i32_0 : i32, i32
  }
  func.func @transform_7(%arg0: i32, %arg1: i32) -> (i32, i32) {
    %c0_i32 = arith.constant 0 : i32
    %c0_i32_0 = arith.constant 0 : i32
    %c0_i32_1 = arith.constant 0 : i32
    return %c0_i32, %c0_i32_0 : i32, i32
  }
  func.func @transform_8(%arg0: i32, %arg1: i32) -> (i32, i32, i32) {
    %c0_i32 = arith.constant 0 : i32
    %c0_i32_0 = arith.constant 0 : i32
    return %arg0, %arg1, %c0_i32 : i32, i32, i32
  }
}

module attributes {stable_mosaic.version = 11 : i64} {
  func.func @_readout_sigmoid_kernel(%arg0: i32, %arg1: i32, %arg2: memref<1x128x32xf32, #tpu.memory_space<vmem>>, %arg3: memref<1x1x32xf32, #tpu.memory_space<vmem>>, %arg4: memref<1x32xf32, #tpu.memory_space<vmem>>) attributes {dimension_semantics = [#tpu.dimension_semantics<parallel>, #tpu.dimension_semantics<arbitrary>], iteration_bounds = array<i64: 1, 2>, scalar_prefetch = 0 : i64, scratch_operands = 1 : i64, tpu.core_type = #tpu.core_type<tc>, window_params = [{transform_indices = @transform_0, window_bounds = array<i64: 1, 128, 32>}, {transform_indices = @transform_1, window_bounds = array<i64: 1, 1, 32>}]} {
    %c0_i32 = arith.constant 0 : i32
    %0 = arith.cmpi eq, %arg1, %c0_i32 : i32
    %1 = arith.extui %0 : i1 to i32
    %c0_i32_0 = arith.constant 0 : i32
    %2 = arith.cmpi ne, %1, %c0_i32_0 : i32
    scf.if %2 {
      %cst_9 = arith.constant 0.000000e+00 : f32
      %23 = vector.broadcast %cst_9 : f32 to vector<1x32xf32>
      %c0_10 = arith.constant 0 : index
      %c0_11 = arith.constant 0 : index
      %24 = vector.load %arg4[%c0_10, %c0_11] : memref<1x32xf32, #tpu.memory_space<vmem>>, vector<1x32xf32>
      tpu.vector_store %arg4[%c0_10, %c0_11], %23 {strides = array<i32>} : memref<1x32xf32, #tpu.memory_space<vmem>>, vector<1x32xf32>,
    } else {
    }
    %c128_i32 = arith.constant 128 : i32
    %3 = arith.muli %arg1, %c128_i32 : i32
    %4 = tpu.iota {dimensions = array<i32: 0>} : vector<128x1xi32>
    %5 = vector.broadcast %3 : i32 to vector<128x1xi32>
    %6 = arith.addi %5, %4 : vector<128x1xi32>
    %c256_i32 = arith.constant 256 : i32
    %7 = vector.broadcast %c256_i32 : i32 to vector<128x1xi32>
    %8 = arith.cmpi slt, %6, %7 : vector<128x1xi32>
    %c0 = arith.constant 0 : index
    %c0_1 = arith.constant 0 : index
    %c0_2 = arith.constant 0 : index
    %9 = vector.load %arg2[%c0, %c0_1, %c0_2] : memref<1x128x32xf32, #tpu.memory_space<vmem>>, vector<1x128x32xf32>
    %10 = vector.shape_cast %9 : vector<1x128x32xf32> to vector<128x32xf32>
    %cst = arith.constant 0.000000e+00 : f32
    %11 = vector.shape_cast %8 : vector<128x1xi1> to vector<128x1xi1>
    %12 = vector.broadcast %11 : vector<128x1xi1> to vector<128x32xi1>
    %13 = vector.broadcast %cst : f32 to vector<128x32xf32>
    %14 = arith.select %12, %10, %13 : vector<128x32xi1>, vector<128x32xf32>
    %c0_3 = arith.constant 0 : index
    %c0_4 = arith.constant 0 : index
    %15 = vector.load %arg4[%c0_3, %c0_4] : memref<1x32xf32, #tpu.memory_space<vmem>>, vector<1x32xf32>
    %cst_5 = arith.constant dense<0.000000e+00> : vector<32xf32>
    %16 = vector.multi_reduction <add>, %14, %cst_5 [0] : vector<128x32xf32> to vector<32xf32>
    %17 = vector.shape_cast %16 : vector<32xf32> to vector<1x32xf32>
    %18 = arith.addf %15, %17 : vector<1x32xf32>
    %c0_6 = arith.constant 0 : index
    %c0_7 = arith.constant 0 : index
    %19 = vector.load %arg4[%c0_6, %c0_7] : memref<1x32xf32, #tpu.memory_space<vmem>>, vector<1x32xf32>
    tpu.vector_store %arg4[%c0_6, %c0_7], %18 {strides = array<i32>} : memref<1x32xf32, #tpu.memory_space<vmem>>, vector<1x32xf32>,
    %c1_i32 = arith.constant 1 : i32
    %20 = arith.cmpi eq, %arg1, %c1_i32 : i32
    %21 = arith.extui %20 : i1 to i32
    %c0_i32_8 = arith.constant 0 : i32
    %22 = arith.cmpi ne, %21, %c0_i32_8 : i32
    scf.if %22 {
      %c0_9 = arith.constant 0 : index
      %c0_10 = arith.constant 0 : index
      %23 = vector.load %arg4[%c0_9, %c0_10] : memref<1x32xf32, #tpu.memory_space<vmem>>, vector<1x32xf32>
      %cst_11 = arith.constant 3.906250e-03 : f32
      %24 = vector.broadcast %cst_11 : f32 to vector<1x32xf32>
      %25 = arith.mulf %23, %24 : vector<1x32xf32>
      %26 = arith.negf %25 : vector<1x32xf32>
      %27 = math.exp %26 : vector<1x32xf32>
      %cst_12 = arith.constant 1.000000e+00 : f32
      %28 = vector.broadcast %cst_12 : f32 to vector<1x32xf32>
      %29 = arith.addf %28, %27 : vector<1x32xf32>
      %30 = arith.divf %28, %29 : vector<1x32xf32>
      %c0_13 = arith.constant 0 : index
      %c0_14 = arith.constant 0 : index
      %c0_15 = arith.constant 0 : index
      %31 = vector.load %arg3[%c0_13, %c0_14, %c0_15] : memref<1x1x32xf32, #tpu.memory_space<vmem>>, vector<1x1x32xf32>
      %32 = vector.shape_cast %31 : vector<1x1x32xf32> to vector<1x32xf32>
      %33 = vector.shape_cast %30 : vector<1x32xf32> to vector<1x1x32xf32>
      tpu.vector_store %arg3[%c0_13, %c0_14, %c0_15], %33 {strides = array<i32>} : memref<1x1x32xf32, #tpu.memory_space<vmem>>, vector<1x1x32xf32>,
    } else {
    }
    return
  }
  func.func @transform_0(%arg0: i32, %arg1: i32) -> (i32, i32, i32) {
    %c0_i32 = arith.constant 0 : i32
    %c0_i32_0 = arith.constant 0 : i32
    return %arg0, %arg1, %c0_i32 : i32, i32, i32
  }
  func.func @transform_1(%arg0: i32, %arg1: i32) -> (i32, i32, i32) {
    %c0_i32 = arith.constant 0 : i32
    %c0_i32_0 = arith.constant 0 : i32
    %c0_i32_1 = arith.constant 0 : i32
    return %arg0, %c0_i32, %c0_i32_0 : i32, i32, i32
  }
}

</mosaic_0001>

<bundles_post_ra>
// kernel: _lambda_.12
= control target key start
LH: loop header
LB: loop body
LE: loop exit
PB: predicated region body
PF: predicated region fallthrough
CT: control target
= control target key end

     0   :  { %s881_s17 = smov 0   ;;  %s883_s18 = smov 0   ;;  %s1124_s0 = inlined_call_operand.vmem [shape: f32[1,256,256], index: 0, kind: input, shape index: {}]   ;;  %s1125_s1 = inlined_call_operand.vmem [shape: f32[1,256,32], index: 1, kind: input, shape index: {}]   ;;  %s1126_s2 = inlined_call_operand.vmem [shape: f32[1,32], index: 2, kind: input, shape index: {}]   ;;  %s1127_s3 = inlined_call_operand.<no memory space> [shape: f32[1,1], index: 3, kind: input, shape index: {}]   ;;  %s1128_s4 = inlined_call_operand.vmem [shape: f32[1,256,32], index: 4, kind: output, shape index: {}]  }
   0x1   :  { %v9_v0 = vstv %s1127_s3  ;;  %s885_s19 = smov 0  }
   0x2   :  { %10 = vst [vmem:[#allocation2] sm:$0x1] %v9_v0 }
   0x3 LB: > { %s25_s3 = sadd.s32 1, %s846_s18  ;;  %p663_p0 = scmp.ge.s32.totalorder %s850_s19, 1  ;;  %s850_s19 = sphi %s885_s19, %s16_s19   ;;  %s846_s18 = sphi %s883_s18, %s1130_s18   ;;  %s842_s17 = sphi %s881_s17, %s1129_s17  }
   0x4   : > { %p26_p1 = scmp.ge.s32.totalorder %s25_s3, 2  ;;  %p196_p2 = scmp.lt.s32.totalorder %s850_s19, 3 }
   0x6   : > { %s1132_s3 = smov (%p26_p1, %s25_s3), 0  ;;  %p197_p3 = pnand %p663_p0, %p196_p2 }
   0x7   : > { %v310_v1 = vld [vmem:[%s1125_s1 + $0x80] sm:$0xff] (!%p197_p3)  ;;  %v311_v2 = vld [vmem:[%s1125_s1 + $0x88] sm:$0xff] (!%p197_p3)  ;;  %s664_s26 = sshll.u32 (!%p197_p3), %s842_s17, 4  ;;  %v312_v6 = vld [vmem:[%s1125_s1 + $0x90] sm:$0xff] (!%p197_p3)  ;;  %v852_v8 = vmov (!%p197_p3), 0   ;;  %vm536_vm0 = vcmask (!%p197_p3), 261120  }
   0x8   : > { %200 = sbr.rel (%p197_p3) target bundleno = 292 (0x124), region = 36  ;;  %v294_v3 = vld [vmem:[%s1125_s1] sm:$0xff] (!%p197_p3)  ;;  %v754_v4 = vpack.c.bf16 (!%p197_p3), %v311_v2, %v310_v1  ;;  %v295_v5 = vld [vmem:[%s1125_s1 + $0x8] sm:$0xff] (!%p197_p3)  ;;  %v313_v7 = vld [vmem:[%s1125_s1 + $0x98] sm:$0xff] (!%p197_p3)  ;;  %p239_p4 = scmp.lt.s32.totalorder (!%p197_p3), %s664_s26, 31  ;;  %827 = vset.pattern.permute.xlu0 (!%p197_p3), %v852_v8 }
   0x9   : > { %v756_v9 = vpack.c.bf16 (!%p197_p3), %v295_v5, %v294_v3  ;;  %v758_v10 = vpack.c.bf16 (!%p197_p3), %v313_v7, %v312_v6  ;;  %v296_v11 = vld [vmem:[%s1125_s1 + $0x10] sm:$0xff] (!%p197_p3)  ;;  %v297_v12 = vld [vmem:[%s1125_s1 + $0x18] sm:$0xff] (!%p197_p3)  ;;  %v314_v13 = vld [vmem:[%s1125_s1 + $0xa0] sm:$0xff] (!%p197_p3) }
   0xa   : > { %755 = vmatprep.subr.bf16.mxu0 (!%p197_p3), %v754_v4  ;;  %786 = vmatprep.subr.bf16.mxu1 (!%p197_p3), %v754_v4  ;;  %v315_v14 = vld [vmem:[%s1125_s1 + $0xa8] sm:$0xff] (!%p197_p3)  ;;  %v760_v15 = vpack.c.bf16 (!%p197_p3), %v297_v12, %v296_v11  ;;  %v298_v17 = vld [vmem:[%s1125_s1 + $0x20] sm:$0xff] (!%p197_p3)  ;;  %v316_v19 = vld [vmem:[%s1125_s1 + $0xb0] sm:$0xff] (!%p197_p3) }
   0xb   : > { %757 = vmatpush3.bf16.msra.mxu0 (!%p197_p3), %v756_v9  ;;  %794 = vmatpush3.bf16.msra.mxu1 (!%p197_p3), %v756_v9  ;;  %v762_v16 = vpack.c.bf16 (!%p197_p3), %v315_v14, %v314_v13  ;;  %v299_v18 = vld [vmem:[%s1125_s1 + $0x28] sm:$0xff] (!%p197_p3)  ;;  %v317_v20 = vld [vmem:[%s1125_s1 + $0xb8] sm:$0xff] (!%p197_p3)  ;;  %v300_v23 = vld [vmem:[%s1125_s1 + $0x30] sm:$0xff] (!%p197_p3) }
   0xc   : > { %759 = vmatprep.subr.bf16.mxu0 (!%p197_p3), %v758_v10  ;;  %787 = vmatprep.subr.bf16.mxu1 (!%p197_p3), %v758_v10  ;;  %v764_v21 = vpack.c.bf16 (!%p197_p3), %v299_v18, %v298_v17  ;;  %v766_v22 = vpack.c.bf16 (!%p197_p3), %v317_v20, %v316_v19  ;;  %v301_v24 = vld [vmem:[%s1125_s1 + $0x38] sm:$0xff] (!%p197_p3)  ;;  %v318_v25 = vld [vmem:[%s1125_s1 + $0xc0] sm:$0xff] (!%p197_p3)  ;;  %v319_v26 = vld [vmem:[%s1125_s1 + $0xc8] sm:$0xff] (!%p197_p3) }
   0xd   : > { %v768_v29 = vpack.c.bf16 (!%p197_p3), %v301_v24, %v300_v23  ;;  %v770_v30 = vpack.c.bf16 (!%p197_p3), %v319_v26, %v318_v25  ;;  %v302_v31 = vld [vmem:[%s1125_s1 + $0x40] sm:$0xff] (!%p197_p3)  ;;  %v303_v32 = vld [vmem:[%s1125_s1 + $0x48] sm:$0xff] (!%p197_p3)  ;;  %v320_v33 = vld [vmem:[%s1125_s1 + $0xd0] sm:$0xff] (!%p197_p3) }
   0xe   : > { %v321_v34 = vld [vmem:[%s1125_s1 + $0xd8] sm:$0xff] (!%p197_p3)  ;;  %v772_v35 = vpack.c.bf16 (!%p197_p3), %v303_v32, %v302_v31  ;;  %v304_v37 = vld [vmem:[%s1125_s1 + $0x50] sm:$0xff] (!%p197_p3)  ;;  %v322_v39 = vld [vmem:[%s1125_s1 + $0xe0] sm:$0xff] (!%p197_p3) }
   0xf   : > { %s1134_s26 = smov (!%p239_p4, %s664_s26), 31  ;;  %761 = vmatpush3.bf16.msra.mxu0 %v760_v15  ;;  %795 = vmatpush3.bf16.msra.mxu1 %v760_v15  ;;  %v774_v36 = vpack.c.bf16 %v321_v34, %v320_v33  ;;  %v305_v38 = vld [vmem:[%s1125_s1 + $0x58] sm:$0xff]  ;;  %v323_v40 = vld [vmem:[%s1125_s1 + $0xe8] sm:$0xff]  ;;  %v306_v43 = vld [vmem:[%s1125_s1 + $0x60] sm:$0xff] }
  0x10   : > { %s673_s21 = sshll.u32 %s1134_s26, 4  ;;  %763 = vmatprep.subr.bf16.mxu0 %v762_v16  ;;  %788 = vmatprep.subr.bf16.mxu1 %v762_v16  ;;  %v776_v41 = vpack.c.bf16 %v305_v38, %v304_v37  ;;  %v778_v42 = vpack.c.bf16 %v323_v40, %v322_v39  ;;  %v307_v44 = vld [vmem:[%s1125_s1 + $0x68] sm:$0xff]  ;;  %v670_v45 = vld [vmem:[#allocation2] ss:$0 sm:$0xff]  ;;  %v324_v46 = vld [vmem:[%s1125_s1 + $0xf0] sm:$0xff]  ;;  %s668_s22 = sshll.u32 %s1134_s26, 3 }
  0x11   : > { %s950_s29 = scalar_lea.vmem %s1124_s0, %s673_s21  ;;  %v325_v47 = vld [vmem:[%s1125_s1 + $0xf8] sm:$0xff]  ;;  %501 = vperm.xlu0 %827, %v670_v45   ;;  %v780_v48 = vpack.c.bf16 %v307_v44, %v306_v43  ;;  %v308_v50 = vld [vmem:[%s1125_s1 + $0x70] sm:$0xff]  ;;  %s1051_s24 = scalar_lea.vmem %s1128_s4, %s668_s22 }
  0x12   : > { %v263_v27 = vld [vmem:[%s950_s29 + $0x8] sm:$0xff]  ;;  %v782_v49 = vpack.c.bf16 %v325_v47, %v324_v46  ;;  %v309_v51 = vld [vmem:[%s1125_s1 + $0x78] sm:$0xff]  ;;  %v262_v53 = vld [vmem:[%s950_s29] sm:$0xff] }
  0x13   : > { %397 = vmatprep.mubr.f32.mxu0 %v263_v27  ;;  %v279_v28 = vld [vmem:[%s950_s29 + $0x88] sm:$0xff]  ;;  %765 = vmatpush3.bf16.msra.mxu0 %v764_v21  ;;  %v784_v52 = vpack.c.bf16 %v309_v51, %v308_v50  ;;  %v278_v54 = vld [vmem:[%s950_s29 + $0x80] sm:$0xff]  ;;  %v265_v55 = vld [vmem:[%s950_s29 + $0x18] sm:$0xff] }
  0x14   : > { %796 = vmatpush3.bf16.msra.mxu1 %v764_v21  ;;  %767 = vmatprep.subr.bf16.mxu0 %v766_v22  ;;  %v281_v56 = vld [vmem:[%s950_s29 + $0x98] sm:$0xff]  ;;  %v264_v57 = vld [vmem:[%s950_s29 + $0x10] sm:$0xff]  ;;  %v267_v59 = vld [vmem:[%s950_s29 + $0x28] sm:$0xff] }
  0x15   : > { %789 = vmatprep.subr.bf16.mxu1 %v766_v22  ;;  %437 = vmatprep.mubr.f32.mxu1 %v279_v28  ;;  %v280_v58 = vld [vmem:[%s950_s29 + $0x90] sm:$0xff]  ;;  %v283_v60 = vld [vmem:[%s950_s29 + $0xa8] sm:$0xff]  ;;  %v266_v61 = vld [vmem:[%s950_s29 + $0x20] sm:$0xff] }
  0x16   : > { %v282_v62 = vld [vmem:[%s950_s29 + $0xa0] sm:$0xff]  ;;  %v269_v63 = vld [vmem:[%s950_s29 + $0x38] sm:$0xff]  ;;  %v268_v1 = vld [vmem:[%s950_s29 + $0x30] sm:$0xff] }
  0x17   : > { %769 = vmatpush3.bf16.msra.mxu0 %v768_v29  ;;  %v285_v0 = vld [vmem:[%s950_s29 + $0xb8] sm:$0xff]  ;;  %v284_v2 = vld [vmem:[%s950_s29 + $0xb0] sm:$0xff]  ;;  %v271_v3 = vld [vmem:[%s950_s29 + $0x48] sm:$0xff] }
  0x18   : > { %797 = vmatpush3.bf16.msra.mxu1 %v768_v29  ;;  %771 = vmatprep.subr.bf16.mxu0 %v770_v30  ;;  %v287_v4 = vld [vmem:[%s950_s29 + $0xc8] sm:$0xff]  ;;  %v270_v5 = vld [vmem:[%s950_s29 + $0x40] sm:$0xff]  ;;  %v273_v7 = vld [vmem:[%s950_s29 + $0x58] sm:$0xff] }
  0x19   : > { %790 = vmatprep.subr.bf16.mxu1 %v770_v30  ;;  %v286_v6 = vld [vmem:[%s950_s29 + $0xc0] sm:$0xff]  ;;  %v289_v8 = vld [vmem:[%s950_s29 + $0xd8] sm:$0xff]  ;;  %v272_v9 = vld [vmem:[%s950_s29 + $0x50] sm:$0xff] }
  0x1a   : > { %v288_v10 = vld [vmem:[%s950_s29 + $0xd0] sm:$0xff]  ;;  %v275_v11 = vld [vmem:[%s950_s29 + $0x68] sm:$0xff]  ;;  %v274_v13 = vld [vmem:[%s950_s29 + $0x60] sm:$0xff] }
  0x1b   : > { %773 = vmatpush3.bf16.msra.mxu0 %v772_v35  ;;  %v291_v12 = vld [vmem:[%s950_s29 + $0xe8] sm:$0xff]  ;;  %v290_v14 = vld [vmem:[%s950_s29 + $0xe0] sm:$0xff]  ;;  %v277_v15 = vld [vmem:[%s950_s29 + $0x78] sm:$0xff] }
  0x1c   : > { %798 = vmatpush3.bf16.msra.mxu1 %v772_v35  ;;  %775 = vmatprep.subr.bf16.mxu0 %v774_v36  ;;  %v293_v16 = vld [vmem:[%s950_s29 + $0xf8] sm:$0xff]  ;;  %v276_v17 = vld [vmem:[%s950_s29 + $0x70] sm:$0xff]  ;;  %v1041_v21 = vld [vmem:[%s1126_s2] ss:$0 sm:$0xff] }
  0x1d   : > { %791 = vmatprep.subr.bf16.mxu1 %v774_v36  ;;  %v292_v18 = vld [vmem:[%s950_s29 + $0xf0] sm:$0xff] }
  0x1f   : > { %777 = vmatpush3.bf16.msra.mxu0 %v776_v41 }
  0x20   : > { %799 = vmatpush3.bf16.msra.mxu1 %v776_v41  ;;  %779 = vmatprep.subr.bf16.mxu0 %v778_v42 }
  0x21   : > { %792 = vmatprep.subr.bf16.mxu1 %v778_v42 }
  0x23   : > { %781 = vmatpush3.bf16.msra.mxu0 %v780_v48 }
  0x24   : > { %800 = vmatpush3.bf16.msra.mxu1 %v780_v48  ;;  %783 = vmatprep.subr.bf16.mxu0 %v782_v49 }
  0x25   : > { %793 = vmatprep.subr.bf16.mxu1 %v782_v49 }
  0x27   : > { %785 = vmatpush3.bf16.msra.mxu0 %v784_v52 }
  0x28   : > { %801 = vmatpush3.bf16.msra.mxu1 %v784_v52 }
  0x2a   : > { %398 = vmatmul.mubr.f32.vlgmr.msra.gmra.mrb[0].mxu0 %v262_v53 }
  0x2b   : > { %438 = vmatmul.mubr.f32.vlgmr.msra.gmra.mrb[0].mxu1 %v278_v54  ;;  %402 = vmatprep.mubr.f32.mxu0 %v265_v55 }
  0x2c   : > { %442 = vmatprep.mubr.f32.mxu1 %v281_v56 }
  0x2e   : > { %403 = vmatmul.mubr.f32.gmra.mrb[2].mxu0 %v264_v57 }
  0x2f   : > { %443 = vmatmul.mubr.f32.gmra.mrb[2].mxu1 %v280_v58  ;;  %407 = vmatprep.mubr.f32.mxu0 %v267_v59 }
  0x30   : > { %447 = vmatprep.mubr.f32.mxu1 %v283_v60 }
  0x32   : > { %408 = vmatmul.mubr.f32.gmra.mrb[4].mxu0 %v266_v61 }
  0x33   : > { %448 = vmatmul.mubr.f32.gmra.mrb[4].mxu1 %v282_v62  ;;  %412 = vmatprep.mubr.f32.mxu0 %v269_v63 }
  0x34   : > { %452 = vmatprep.mubr.f32.mxu1 %v285_v0 }
  0x36   : > { %413 = vmatmul.mubr.f32.gmra.mrb[6].mxu0 %v268_v1 }
  0x37   : > { %453 = vmatmul.mubr.f32.gmra.mrb[6].mxu1 %v284_v2  ;;  %417 = vmatprep.mubr.f32.mxu0 %v271_v3 }
  0x38   : > { %457 = vmatprep.mubr.f32.mxu1 %v287_v4 }
  0x3a   : > { %418 = vmatmul.mubr.f32.gmra.mrb[8].mxu0 %v270_v5 }
  0x3b   : > { %458 = vmatmul.mubr.f32.gmra.mrb[8].mxu1 %v286_v6  ;;  %422 = vmatprep.mubr.f32.mxu0 %v273_v7 }
  0x3c   : > { %462 = vmatprep.mubr.f32.mxu1 %v289_v8 }
  0x3e   : > { %423 = vmatmul.mubr.f32.gmra.mrb[10].mxu0 %v272_v9 }
  0x3f   : > { %463 = vmatmul.mubr.f32.gmra.mrb[10].mxu1 %v288_v10  ;;  %427 = vmatprep.mubr.f32.mxu0 %v275_v11 }
  0x40   : > { %467 = vmatprep.mubr.f32.mxu1 %v291_v12 }
  0x42   : > { %428 = vmatmul.mubr.f32.gmra.mrb[12].mxu0 %v274_v13 }
  0x43   : > { %468 = vmatmul.mubr.f32.gmra.mrb[12].mxu1 %v290_v14  ;;  %432 = vmatprep.mubr.f32.mxu0 %v277_v15 }
  0x44   : > { %472 = vmatprep.mubr.f32.mxu1 %v293_v16 }
  0x46   : > { %433 = vmatmul.mubr.f32.gmra.mrb[14].mxu0 %v276_v17 }
  0x47   : > { %473 = vmatmul.mubr.f32.gmra.mrb[14].mxu1 %v292_v18 }
  0x90   : > { %v1043_v26 = vpop.permute.xlu0 %501 }
  0xfd   : > { %v706_v19 = vpop.f32.mrb[0].mxu0 }
  0xfe   : > { %v730_v20 = vpop.f32.mrb[0].mxu1  ;;  %v707_v22 = vpop.f32.mrb[1].mxu0 }
  0xff   : > { %v731_v23 = vpop.f32.mrb[1].mxu1  ;;  %v708_v24 = vadd.f32 %v707_v22, %v706_v19 }
 0x100   : > { %v732_v25 = vadd.f32 %v731_v23, %v730_v20 }
 0x101   : > { %v400_v27 = vadd.f32 %v708_v24, %v1041_v21  ;;  %v709_v29 = vpop.f32.mrb[2].mxu0 }
 0x102   : > { %v440_v28 = vadd.f32 %v732_v25, %v1041_v21  ;;  %v733_v30 = vpop.f32.mrb[2].mxu1  ;;  %v710_v31 = vpop.f32.mrb[3].mxu0 }
 0x103   : > { %v734_v32 = vpop.f32.mrb[3].mxu1  ;;  %vm478_vm1 = vcmp.ge.f32.partialorder %v400_v27, 0.0  ;;  %v504_v33 = vmul.f32 %v1043_v26, %v400_v27  ;;  %v711_v35 = vadd.f32 %v710_v31, %v709_v29 }
 0x104   : > { %vm486_vm2 = vcmp.ge.f32.partialorder %v440_v28, 0.0  ;;  %v512_v34 = vmul.f32 %v1043_v26, %v440_v28  ;;  %v735_v36 = vadd.f32 %v734_v32, %v733_v30 }
 0x105   : > { %v520_v37 = vsel %vm478_vm1, %v400_v27, %v504_v33  ;;  %v712_v39 = vpop.f32.mrb[4].mxu0  ;;  %v405_v41 = vadd.f32 %v711_v35, %v1041_v21 }
 0x106   : > { %v528_v38 = vsel %vm486_vm2, %v440_v28, %v512_v34  ;;  %v736_v40 = vpop.f32.mrb[4].mxu1  ;;  %537 = vst.msk [vmem:[%s1051_s24] sm:$0xff] %vm536_vm0, %v520_v37  ;;  %v445_v42 = vadd.f32 %v735_v36, %v1041_v21  ;;  %v713_v43 = vpop.f32.mrb[5].mxu0 }
 0x107   : > { %545 = vst.msk [vmem:[%s1051_s24 + $0x40] sm:$0xff] %vm536_vm0, %v528_v38  ;;  %v737_v44 = vpop.f32.mrb[5].mxu1  ;;  %v714_v45 = vadd.f32 %v713_v43, %v712_v39  ;;  %vm479_vm3 = vcmp.ge.f32.partialorder %v405_v41, 0.0  ;;  %v505_v47 = vmul.f32 %v1043_v26, %v405_v41 }
 0x108   : > { %v738_v46 = vadd.f32 %v737_v44, %v736_v40  ;;  %vm487_vm4 = vcmp.ge.f32.partialorder %v445_v42, 0.0  ;;  %v513_v48 = vmul.f32 %v1043_v26, %v445_v42 }
 0x109   : > { %v410_v49 = vadd.f32 %v714_v45, %v1041_v21  ;;  %v715_v51 = vpop.f32.mrb[6].mxu0  ;;  %v521_v53 = vsel %vm479_vm3, %v405_v41, %v505_v47 }
 0x10a   : > { %v450_v50 = vadd.f32 %v738_v46, %v1041_v21  ;;  %v739_v52 = vpop.f32.mrb[6].mxu1  ;;  %v529_v54 = vsel %vm487_vm4, %v445_v42, %v513_v48  ;;  %v716_v55 = vpop.f32.mrb[7].mxu0  ;;  %538 = vst.msk [vmem:[%s1051_s24 + $0x8] sm:$0xff] %vm536_vm0, %v521_v53 }
 0x10b   : > { %v740_v56 = vpop.f32.mrb[7].mxu1  ;;  %546 = vst.msk [vmem:[%s1051_s24 + $0x48] sm:$0xff] %vm536_vm0, %v529_v54  ;;  %vm480_vm5 = vcmp.ge.f32.partialorder %v410_v49, 0.0  ;;  %v506_v57 = vmul.f32 %v1043_v26, %v410_v49  ;;  %v717_v59 = vadd.f32 %v716_v55, %v715_v51 }
 0x10c   : > { %vm488_vm6 = vcmp.ge.f32.partialorder %v450_v50, 0.0  ;;  %v514_v58 = vmul.f32 %v1043_v26, %v450_v50  ;;  %v741_v60 = vadd.f32 %v740_v56, %v739_v52 }
 0x10d   : > { %v522_v61 = vsel %vm480_vm5, %v410_v49, %v506_v57  ;;  %v718_v63 = vpop.f32.mrb[8].mxu0  ;;  %v415_v1 = vadd.f32 %v717_v59, %v1041_v21 }
 0x10e   : > { %v530_v62 = vsel %vm488_vm6, %v450_v50, %v514_v58  ;;  %v742_v0 = vpop.f32.mrb[8].mxu1  ;;  %539 = vst.msk [vmem:[%s1051_s24 + $0x10] sm:$0xff] %vm536_vm0, %v522_v61  ;;  %v455_v2 = vadd.f32 %v741_v60, %v1041_v21  ;;  %v719_v3 = vpop.f32.mrb[9].mxu0 }
 0x10f   : > { %547 = vst.msk [vmem:[%s1051_s24 + $0x50] sm:$0xff] %vm536_vm0, %v530_v62  ;;  %v743_v4 = vpop.f32.mrb[9].mxu1  ;;  %v720_v5 = vadd.f32 %v719_v3, %v718_v63  ;;  %vm481_vm7 = vcmp.ge.f32.partialorder %v415_v1, 0.0  ;;  %v507_v7 = vmul.f32 %v1043_v26, %v415_v1 }
 0x110   : > { %v744_v6 = vadd.f32 %v743_v4, %v742_v0  ;;  %vm489_vm8 = vcmp.ge.f32.partialorder %v455_v2, 0.0  ;;  %v515_v8 = vmul.f32 %v1043_v26, %v455_v2 }
 0x111   : > { %v420_v9 = vadd.f32 %v720_v5, %v1041_v21  ;;  %v721_v11 = vpop.f32.mrb[10].mxu0  ;;  %v523_v13 = vsel %vm481_vm7, %v415_v1, %v507_v7 }
 0x112   : > { %v460_v10 = vadd.f32 %v744_v6, %v1041_v21  ;;  %v745_v12 = vpop.f32.mrb[10].mxu1  ;;  %v531_v14 = vsel %vm489_vm8, %v455_v2, %v515_v8  ;;  %v722_v15 = vpop.f32.mrb[11].mxu0  ;;  %540 = vst.msk [vmem:[%s1051_s24 + $0x18] sm:$0xff] %vm536_vm0, %v523_v13 }
 0x113   : > { %v746_v16 = vpop.f32.mrb[11].mxu1  ;;  %548 = vst.msk [vmem:[%s1051_s24 + $0x58] sm:$0xff] %vm536_vm0, %v531_v14  ;;  %vm482_vm9 = vcmp.ge.f32.partialorder %v420_v9, 0.0  ;;  %v508_v17 = vmul.f32 %v1043_v26, %v420_v9  ;;  %v723_v19 = vadd.f32 %v722_v15, %v721_v11 }
 0x114   : > { %vm490_vm10 = vcmp.ge.f32.partialorder %v460_v10, 0.0  ;;  %v516_v18 = vmul.f32 %v1043_v26, %v460_v10  ;;  %v747_v20 = vadd.f32 %v746_v16, %v745_v12 }
 0x115   : > { %v524_v22 = vsel %vm482_vm9, %v420_v9, %v508_v17  ;;  %v724_v24 = vpop.f32.mrb[12].mxu0  ;;  %v425_v27 = vadd.f32 %v723_v19, %v1041_v21 }
 0x116   : > { %v532_v23 = vsel %vm490_vm10, %v460_v10, %v516_v18  ;;  %v748_v25 = vpop.f32.mrb[12].mxu1  ;;  %541 = vst.msk [vmem:[%s1051_s24 + $0x20] sm:$0xff] %vm536_vm0, %v524_v22  ;;  %v465_v28 = vadd.f32 %v747_v20, %v1041_v21  ;;  %v725_v29 = vpop.f32.mrb[13].mxu0 }
 0x117   : > { %549 = vst.msk [vmem:[%s1051_s24 + $0x60] sm:$0xff] %vm536_vm0, %v532_v23  ;;  %v749_v30 = vpop.f32.mrb[13].mxu1  ;;  %v726_v31 = vadd.f32 %v725_v29, %v724_v24  ;;  %vm483_vm11 = vcmp.ge.f32.partialorder %v425_v27, 0.0  ;;  %v509_v33 = vmul.f32 %v1043_v26, %v425_v27 }
 0x118   : > { %v750_v32 = vadd.f32 %v749_v30, %v748_v25  ;;  %vm491_vm12 = vcmp.ge.f32.partialorder %v465_v28, 0.0  ;;  %v517_v34 = vmul.f32 %v1043_v26, %v465_v28 }
 0x119   : > { %v430_v35 = vadd.f32 %v726_v31, %v1041_v21  ;;  %v727_v37 = vpop.f32.mrb[14].mxu0  ;;  %v525_v39 = vsel %vm483_vm11, %v425_v27, %v509_v33 }
 0x11a   : > { %v470_v36 = vadd.f32 %v750_v32, %v1041_v21  ;;  %v751_v38 = vpop.f32.mrb[14].mxu1  ;;  %v533_v40 = vsel %vm491_vm12, %v465_v28, %v517_v34  ;;  %v728_v41 = vpop.f32.mrb[15].mxu0  ;;  %542 = vst.msk [vmem:[%s1051_s24 + $0x28] sm:$0xff] %vm536_vm0, %v525_v39 }
 0x11b   : > { %v752_v42 = vpop.f32.mrb[15].mxu1  ;;  %550 = vst.msk [vmem:[%s1051_s24 + $0x68] sm:$0xff] %vm536_vm0, %v533_v40  ;;  %vm484_vm13 = vcmp.ge.f32.partialorder %v430_v35, 0.0  ;;  %v510_v43 = vmul.f32 %v1043_v26, %v430_v35  ;;  %v729_v45 = vadd.f32 %v728_v41, %v727_v37 }
 0x11c   : > { %vm492_vm14 = vcmp.ge.f32.partialorder %v470_v36, 0.0  ;;  %v518_v44 = vmul.f32 %v1043_v26, %v470_v36  ;;  %v753_v46 = vadd.f32 %v752_v42, %v751_v38 }
 0x11d   : > { %v526_v47 = vsel %vm484_vm13, %v430_v35, %v510_v43  ;;  %v435_v49 = vadd.f32 %v729_v45, %v1041_v21 }
 0x11e   : > { %v534_v48 = vsel %vm492_vm14, %v470_v36, %v518_v44  ;;  %543 = vst.msk [vmem:[%s1051_s24 + $0x30] sm:$0xff] %vm536_vm0, %v526_v47  ;;  %v475_v50 = vadd.f32 %v753_v46, %v1041_v21 }
 0x11f   : > { %551 = vst.msk [vmem:[%s1051_s24 + $0x70] sm:$0xff] %vm536_vm0, %v534_v48  ;;  %vm485_vm15 = vcmp.ge.f32.partialorder %v435_v49, 0.0  ;;  %v511_v51 = vmul.f32 %v1043_v26, %v435_v49 }
 0x120   : > { %vm493_vm1 = vcmp.ge.f32.partialorder %v475_v50, 0.0  ;;  %v519_v52 = vmul.f32 %v1043_v26, %v475_v50 }
 0x121   : > { %v527_v53 = vsel %vm485_vm15, %v435_v49, %v511_v51 }
 0x122   : > { %v535_v54 = vsel %vm493_vm1, %v475_v50, %v519_v52  ;;  %544 = vst.msk [vmem:[%s1051_s24 + $0x38] sm:$0xff] %vm536_vm0, %v527_v53 }
 0x123   : > { %552 = vst.msk [vmem:[%s1051_s24 + $0x78] sm:$0xff] %vm536_vm0, %v535_v54 }
 0x124 PF: > { %s16_s19 = sadd.s32 1, %s850_s19   ;;  %s1129_s17 = smov %s846_s18 }
 0x125   : > { %p13_p5 = scmp.ge.s32.totalorder %s16_s19, 4   ;;  %s1130_s18 = smov %s1132_s3 }
 0x127   :  { %15 = sbr.rel (!%p13_p5) target bundleno = 3 (0x3), region = 69 }

// kernel: _lambda_.11
= control target key start
LH: loop header
LB: loop body
LE: loop exit
PB: predicated region body
PF: predicated region fallthrough
CT: control target
= control target key end

     0   :  { %s683_s9 = smov 0   ;;  %s685_s10 = smov 0   ;;  %s815_s0 = inlined_call_operand.vmem [shape: f32[1,256,64], index: 0, kind: input, shape index: {}]   ;;  %s816_s1 = inlined_call_operand.vmem [shape: f32[64,32], index: 1, kind: input, shape index: {}]   ;;  %s817_s2 = inlined_call_operand.vmem [shape: f32[1,256,32], index: 2, kind: output, shape index: {}]  }
   0x1   :  { %s687_s11 = smov 0  }
   0x2 LB: > { %s21_s12 = sadd.s32 1, %s662_s10  ;;  %p509_p0 = scmp.ge.s32.totalorder %s666_s11, 1  ;;  %s666_s11 = sphi %s687_s11, %s12_s11   ;;  %s662_s10 = sphi %s685_s10, %s819_s10   ;;  %s658_s9 = sphi %s683_s9, %s818_s9  }
   0x3   : > { %p22_p1 = scmp.ge.s32.totalorder %s21_s12, 2  ;;  %p133_p2 = scmp.lt.s32.totalorder %s666_s11, 3 }
   0x5   : > { %s821_s12 = smov (%p22_p1, %s21_s12), 0  ;;  %p134_p3 = pnand %p509_p0, %p133_p2 }
   0x6   : > { %v199_v0 = vld [vmem:[%s816_s1] sm:$0xff] (!%p134_p3)  ;;  %v200_v1 = vld [vmem:[%s816_s1 + $0x8] sm:$0xff] (!%p134_p3)  ;;  %v201_v2 = vld [vmem:[%s816_s1 + $0x10] sm:$0xff] (!%p134_p3)  ;;  %s510_s19 = sshll.u32 (!%p134_p3), %s658_s9, 4  ;;  %vm207_vm0 = vcmask (!%p134_p3), 523264   ;;  %vm401_vm1 = vcmask (!%p134_p3), 261120  }
   0x7   : > { %137 = sbr.rel (%p134_p3) target bundleno = 252 (0xfc), region = 28  ;;  %v596_v3 = vpack.c.bf16 (!%p134_p3), %v200_v1, %v199_v0  ;;  %v202_v4 = vld [vmem:[%s816_s1 + $0x18] sm:$0xff] (!%p134_p3)  ;;  %p166_p4 = scmp.lt.s32.totalorder (!%p134_p3), %s510_s19, 31  ;;  %v203_v6 = vld [vmem:[%s816_s1 + $0x20] sm:$0xff] (!%p134_p3)  ;;  %v204_v7 = vld [vmem:[%s816_s1 + $0x28] sm:$0xff] (!%p134_p3) }
   0x8   : > { %v600_v5 = vpack.c.bf16 (!%p134_p3), %v202_v4, %v201_v2  ;;  %v604_v8 = vpack.c.bf16 (!%p134_p3), %v204_v7, %v203_v6  ;;  %v205_v9 = vld [vmem:[%s816_s1 + $0x30] sm:$0xff] (!%p134_p3)  ;;  %v206_v10 = vld [vmem:[%s816_s1 + $0x38] sm:$0xff] (!%p134_p3) }
   0x9   : > { %597 = vmatprep.subr.bf16.mxu0 (!%p134_p3), %v596_v3  ;;  %612 = vmatprep.subr.bf16.mxu1 (!%p134_p3), %v596_v3  ;;  %v608_v13 = vpack.c.bf16 (!%p134_p3), %v206_v10, %v205_v9 }
   0xa   : > { %599 = vmatpush3.bf16.msra.mxu0 (!%p134_p3), %v596_v3  ;;  %616 = vmatpush3.bf16.msra.mxu1 (!%p134_p3), %v596_v3 }
   0xb   : > { %601 = vmatprep.subr.bf16.mxu0 (!%p134_p3), %v600_v5  ;;  %613 = vmatprep.subr.bf16.mxu1 (!%p134_p3), %v600_v5 }
   0xe   : > { %s823_s19 = smov (!%p166_p4, %s510_s19), 31  ;;  %603 = vmatpush3.bf16.msra.mxu0 %v600_v5  ;;  %617 = vmatpush3.bf16.msra.mxu1 %v600_v5 }
   0xf   : > { %s511_s26 = sshll.u32 %s823_s19, 3  ;;  %605 = vmatprep.subr.bf16.mxu0 %v604_v8  ;;  %614 = vmatprep.subr.bf16.mxu1 %v604_v8 }
  0x10   : > { %s733_s5 = scalar_lea.vmem %s815_s0, %s511_s26  ;;  %s772_s8 = scalar_lea.vmem %s817_s2, %s511_s26 }
  0x11   : > { %v183_v11 = vld [vmem:[%s733_s5] sm:$0xff]  ;;  %v184_v14 = vld [vmem:[%s733_s5 + $0x8] sm:$0xff]  ;;  %v185_v16 = vld [vmem:[%s733_s5 + $0x10] sm:$0xff] }
  0x12   : > { %v191_v12 = vld [vmem:[%s733_s5 + $0x40] sm:$0xff]  ;;  %572 = vmatprep.mubr.msk.f32.mxu0 %vm207_vm0, %v183_v11  ;;  %607 = vmatpush3.bf16.msra.mxu0 %v604_v8  ;;  %v192_v15 = vld [vmem:[%s733_s5 + $0x48] sm:$0xff]  ;;  %v193_v17 = vld [vmem:[%s733_s5 + $0x50] sm:$0xff] }
  0x13   : > { %584 = vmatprep.mubr.msk.f32.mxu1 %vm207_vm0, %v191_v12  ;;  %618 = vmatpush3.bf16.msra.mxu1 %v604_v8  ;;  %v186_v18 = vld [vmem:[%s733_s5 + $0x18] sm:$0xff]  ;;  %v187_v20 = vld [vmem:[%s733_s5 + $0x20] sm:$0xff]  ;;  %v188_v22 = vld [vmem:[%s733_s5 + $0x28] sm:$0xff] }
  0x14   : > { %609 = vmatprep.subr.bf16.mxu0 %v608_v13  ;;  %615 = vmatprep.subr.bf16.mxu1 %v608_v13  ;;  %v194_v19 = vld [vmem:[%s733_s5 + $0x58] sm:$0xff]  ;;  %v195_v21 = vld [vmem:[%s733_s5 + $0x60] sm:$0xff]  ;;  %v196_v23 = vld [vmem:[%s733_s5 + $0x68] sm:$0xff] }
  0x15   : > { %v189_v24 = vld [vmem:[%s733_s5 + $0x30] sm:$0xff]  ;;  %v190_v26 = vld [vmem:[%s733_s5 + $0x38] sm:$0xff] }
  0x16   : > { %611 = vmatpush3.bf16.msra.mxu0 %v608_v13  ;;  %v197_v25 = vld [vmem:[%s733_s5 + $0x70] sm:$0xff]  ;;  %v198_v27 = vld [vmem:[%s733_s5 + $0x78] sm:$0xff] }
  0x17   : > { %619 = vmatpush3.bf16.msra.mxu1 %v608_v13 }
  0x19   : > { %573 = vmatmul.mubr.msk.f32.vlgmr.msra.gmra.mrb[0].mxu0 %vm207_vm0, %v184_v14 }
  0x1a   : > { %585 = vmatmul.mubr.msk.f32.vlgmr.msra.gmra.mrb[0].mxu1 %vm207_vm0, %v192_v15  ;;  %575 = vmatprep.mubr.msk.f32.mxu0 %vm207_vm0, %v185_v16 }
  0x1b   : > { %587 = vmatprep.mubr.msk.f32.mxu1 %vm207_vm0, %v193_v17 }
  0x1d   : > { %576 = vmatmul.mubr.msk.f32.gmra.mrb[2].mxu0 %vm207_vm0, %v186_v18 }
  0x1e   : > { %588 = vmatmul.mubr.msk.f32.gmra.mrb[2].mxu1 %vm207_vm0, %v194_v19  ;;  %578 = vmatprep.mubr.msk.f32.mxu0 %vm207_vm0, %v187_v20 }
  0x1f   : > { %590 = vmatprep.mubr.msk.f32.mxu1 %vm207_vm0, %v195_v21 }
  0x21   : > { %579 = vmatmul.mubr.msk.f32.gmra.mrb[4].mxu0 %vm207_vm0, %v188_v22 }
  0x22   : > { %591 = vmatmul.mubr.msk.f32.gmra.mrb[4].mxu1 %vm207_vm0, %v196_v23  ;;  %581 = vmatprep.mubr.msk.f32.mxu0 %vm207_vm0, %v189_v24 }
  0x23   : > { %593 = vmatprep.mubr.msk.f32.mxu1 %vm207_vm0, %v197_v25 }
  0x25   : > { %582 = vmatmul.mubr.msk.f32.gmra.mrb[6].mxu0 %vm207_vm0, %v190_v26 }
  0x26   : > { %594 = vmatmul.mubr.msk.f32.gmra.mrb[6].mxu1 %vm207_vm0, %v198_v27 }
  0xec   : > { %v574_v28 = vpop.f32.mrb[0].mxu0 }
  0xed   : > { %v586_v29 = vpop.f32.mrb[0].mxu1  ;;  %403 = vst.msk [vmem:[%s772_s8 + $0x8] sm:$0xff] %vm401_vm1, %v574_v28  ;;  %v322_v30 = vpop.f32.mrb[1].mxu0 }
  0xee   : > { %411 = vst.msk [vmem:[%s772_s8 + $0x48] sm:$0xff] %vm401_vm1, %v586_v29  ;;  %v362_v31 = vpop.f32.mrb[1].mxu1  ;;  %402 = vst.msk [vmem:[%s772_s8] sm:$0xff] %vm401_vm1, %v322_v30 }
  0xef   : > { %410 = vst.msk [vmem:[%s772_s8 + $0x40] sm:$0xff] %vm401_vm1, %v362_v31 }
  0xf0   : > { %v577_v32 = vpop.f32.mrb[2].mxu0 }
  0xf1   : > { %v589_v33 = vpop.f32.mrb[2].mxu1  ;;  %405 = vst.msk [vmem:[%s772_s8 + $0x18] sm:$0xff] %vm401_vm1, %v577_v32  ;;  %v332_v34 = vpop.f32.mrb[3].mxu0 }
  0xf2   : > { %413 = vst.msk [vmem:[%s772_s8 + $0x58] sm:$0xff] %vm401_vm1, %v589_v33  ;;  %v372_v35 = vpop.f32.mrb[3].mxu1  ;;  %404 = vst.msk [vmem:[%s772_s8 + $0x10] sm:$0xff] %vm401_vm1, %v332_v34 }
  0xf3   : > { %412 = vst.msk [vmem:[%s772_s8 + $0x50] sm:$0xff] %vm401_vm1, %v372_v35 }
  0xf4   : > { %v580_v36 = vpop.f32.mrb[4].mxu0 }
  0xf5   : > { %v592_v37 = vpop.f32.mrb[4].mxu1  ;;  %407 = vst.msk [vmem:[%s772_s8 + $0x28] sm:$0xff] %vm401_vm1, %v580_v36  ;;  %v342_v38 = vpop.f32.mrb[5].mxu0 }
  0xf6   : > { %415 = vst.msk [vmem:[%s772_s8 + $0x68] sm:$0xff] %vm401_vm1, %v592_v37  ;;  %v382_v39 = vpop.f32.mrb[5].mxu1  ;;  %406 = vst.msk [vmem:[%s772_s8 + $0x20] sm:$0xff] %vm401_vm1, %v342_v38 }
  0xf7   : > { %414 = vst.msk [vmem:[%s772_s8 + $0x60] sm:$0xff] %vm401_vm1, %v382_v39 }
  0xf8   : > { %v583_v40 = vpop.f32.mrb[6].mxu0 }
  0xf9   : > { %v595_v41 = vpop.f32.mrb[6].mxu1  ;;  %409 = vst.msk [vmem:[%s772_s8 + $0x38] sm:$0xff] %vm401_vm1, %v583_v40  ;;  %v352_v42 = vpop.f32.mrb[7].mxu0 }
  0xfa   : > { %417 = vst.msk [vmem:[%s772_s8 + $0x78] sm:$0xff] %vm401_vm1, %v595_v41  ;;  %v392_v43 = vpop.f32.mrb[7].mxu1  ;;  %408 = vst.msk [vmem:[%s772_s8 + $0x30] sm:$0xff] %vm401_vm1, %v352_v42 }
  0xfb   : > { %416 = vst.msk [vmem:[%s772_s8 + $0x70] sm:$0xff] %vm401_vm1, %v392_v43 }
  0xfc PF: > { %s12_s11 = sadd.s32 1, %s666_s11   ;;  %s818_s9 = smov %s662_s10 }
  0xfd   : > { %p9_p5 = scmp.ge.s32.totalorder %s12_s11, 4   ;;  %s819_s10 = smov %s821_s12 }
  0xff   :  { %11 = sbr.rel (!%p9_p5) target bundleno = 2 (0x2), region = 58 }

// kernel: _lambda_.21
= control target key start
LH: loop header
LB: loop body
LE: loop exit
PB: predicated region body
PF: predicated region fallthrough
CT: control target
= control target key end

     0   :  { %s1447_s29 = smov 0   ;;  %s1449_s30 = smov 0   ;;  %s1926_s0 = inlined_call_operand.vmem [shape: f32[1,256,32], index: 0, kind: input, shape index: {}]   ;;  %s1927_s1 = inlined_call_operand.vmem [shape: f32[1,256,32], index: 1, kind: input, shape index: {}]   ;;  %s1928_s2 = inlined_call_operand.vmem [shape: f32[1,256,32], index: 2, kind: input, shape index: {}]   ;;  %s1929_s3 = inlined_call_operand.vmem [shape: f32[1,256,32], index: 3, kind: input, shape index: {}]   ;;  %s1930_s4 = inlined_call_operand.vmem [shape: f32[1,1,32], index: 4, kind: input, shape index: {}]   ;;  %s1931_s5 = inlined_call_operand.vmem [shape: f32[1,1,32], index: 5, kind: input, shape index: {}]   ;;  %s1932_s6 = inlined_call_operand.vmem [shape: f32[32,32], index: 6, kind: input, shape index: {}]   ;;  %s1933_s7 = inlined_call_operand.<no memory space> [shape: f32[1,1], index: 7, kind: input, shape index: {}]   ;;  %s1934_s8 = inlined_call_operand.vmem [shape: f32[1,256,4], index: 8, kind: output, shape index: {}]  }
   0x1   :  { %v13_v0 = vstv %s1933_s7  ;;  %s1451_s9 = smov 0  }
   0x2   :  { %14 = vst [vmem:[#allocation3] sm:$0x1] %v13_v0 }
   0x3 LB: > { %s29_s7 = sadd.s32 1, %s1389_s30  ;;  %p1267_p0 = scmp.ge.s32.totalorder %s1393_s9, 1  ;;  %s1393_s9 = sphi %s1451_s9, %s20_s9   ;;  %s1389_s30 = sphi %s1449_s30, %s1936_s30   ;;  %s1385_s29 = sphi %s1447_s29, %s1935_s29  }
   0x4   : > { %p30_p1 = scmp.ge.s32.totalorder %s29_s7, 2  ;;  %p352_p2 = scmp.lt.s32.totalorder %s1393_s9, 3 }
   0x6   : > { %s1938_s7 = smov (%p30_p1, %s29_s7), 0  ;;  %p353_p3 = pnand %p1267_p0, %p352_p2 }
   0x7   : > { %s1268_s10 = sshll.u32 (!%p353_p3), %s1385_s29, 4  ;;  %p1278_p5 = scmp.ne.s32.totalorder (!%p353_p3), %s1385_s29, 0 }
   0x8   : > { %356 = sbr.rel (%p353_p3) target bundleno = 542 (0x21e), region = 52  ;;  %p430_p4 = scmp.lt.s32.totalorder (!%p353_p3), %s1268_s10, 31 }
   0xf   : > { %s1940_s10 = smov (!%p430_p4, %s1268_s10), 31  ;;  %486 = sbr.rel (%p1278_p5) target bundleno = 247 (0xf7), region = 56 }
  0x10   : > { %s1269_s11 = sshll.u32 %s1940_s10, 3  ;;  %v488_v1 = vld [vmem:[%s1932_s6] sm:$0xff] (!%p1278_p5)  ;;  %v489_v2 = vld [vmem:[%s1932_s6 + $0x8] sm:$0xff] (!%p1278_p5)  ;;  %vm492_vm0 = vcmask (!%p1278_p5), 261120   ;;  %v1395_v3 = vmov (!%p1278_p5), 0.0|0.0   ;;  %vm1396_vm2 = vmmov (!%p1278_p5), 0  }
  0x11   : > { %s1468_s14 = scalar_lea.vmem %s1926_s0, %s1269_s11  ;;  %s1473_s17 = scalar_lea.vmem %s1927_s1, %s1269_s11  ;;  %1326 = vmatprep.subr.bf16.mxu0 (!%p1278_p5), %v1395_v3  ;;  %1334 = vmatprep.subr.bf16.mxu1 (!%p1278_p5), %v1395_v3  ;;  %v1327_v4 = vpack.c.bf16 (!%p1278_p5), %v489_v2, %v488_v1  ;;  %vm1328_vm1 = vmpackc.low (!%p1278_p5), %vm492_vm0, %vm492_vm0  ;;  %v1397_v5 = vmov (!%p1278_p5), 0.0   ;;  %v490_v6 = vld [vmem:[%s1932_s6 + $0x10] sm:$0xff] (!%p1278_p5)  ;;  %v491_v7 = vld [vmem:[%s1932_s6 + $0x18] sm:$0xff] (!%p1278_p5)  ;;  %vm578_vm3 = vcmask (!%p1278_p5), 253952  }
  0x12   : > { %s1478_s20 = scalar_lea.vmem %s1928_s2, %s1269_s11  ;;  %s1483_s23 = scalar_lea.vmem %s1929_s3, %s1269_s11  ;;  %1312 = vmatprep.mubr.msk.f32.mxu0 (!%p1278_p5), %vm1396_vm2, %v1397_v5  ;;  %1323 = vmatprep.mubr.msk.f32.mxu1 (!%p1278_p5), %vm1396_vm2, %v1397_v5  ;;  %v1331_v8 = vpack.c.bf16 (!%p1278_p5), %v491_v7, %v490_v6  ;;  %v487_v9 = vld [vmem:[%s1930_s4] sm:$0x1] (!%p1278_p5) }
  0x13   : > { %s1488_s26 = scalar_lea.vmem %s1934_s8, %s1269_s11  ;;  %1329 = vmatpush3.bf16.xpose.msk.msra.mxu0 (!%p1278_p5), %vm1328_vm1, %v1327_v4  ;;  %1337 = vmatpush3.bf16.xpose.msk.msra.mxu1 (!%p1278_p5), %vm1328_vm1, %v1327_v4  ;;  %v580_v10 = vld [vmem:[%s1931_s5] sm:$0x1] (!%p1278_p5) }
  0x14   : > { %1330 = vmatprep.subr.bf16.mxu0 (!%p1278_p5), %v1395_v3  ;;  %1338 = vmatprep.subr.bf16.mxu1 (!%p1278_p5), %v1395_v3 }
  0x1b   : > { %1333 = vmatpush3.bf16.xpose.msk.msra.mxu0 %vm1328_vm1, %v1331_v8  ;;  %1341 = vmatpush3.bf16.xpose.msk.msra.mxu1 %vm1328_vm1, %v1331_v8 }
  0x22   : > { %1313 = vmatmul.mubr.msk.f32.vlgmr.msra.gmra.mrb[0].mxu0 %vm492_vm0, %v487_v9  ;;  %1324 = vmatmul.mubr.msk.f32.vlgmr.msra.gmra.mrb[0].mxu1 %vm492_vm0, %v580_v10 }
  0xf5   : > { %v574_v11 = vpop.f32.mrb[0].mxu0  ;;  %v666_v12 = vpop.f32.mrb[0].mxu1 }
  0xf6   : > { %579 = vst.msk [vmem:[#allocation2] sm:$0x1] %vm578_vm3, %v574_v11  ;;  %670 = vst.msk [vmem:[#allocation2 + $0x1] sm:$0x1] %vm578_vm3, %v666_v12  ;;  %v1314_v13 = vpop.f32.mrb[1].mxu0  ;;  %v1325_v14 = vpop.f32.mrb[1].mxu1 }
  0xf7 PF: > { %v675_v16 = vld [vmem:[%s1473_s17 + $0x10] sm:$0xff]  ;;  %vm709_vm4 = vcmask 261120   ;;  %v673_v17 = vld [vmem:[%s1473_s17] sm:$0xff]  ;;  %v676_v20 = vld [vmem:[%s1473_s17 + $0x18] sm:$0xff]  ;;  %vm1002_vm5 = vcmask 7168   ;;  %vm1019_vm6 = vcmask 15360  }
  0xf8   : > { %v674_v21 = vld [vmem:[%s1473_s17 + $0x8] sm:$0xff]  ;;  %v677_v25 = vld [vmem:[%s1473_s17 + $0x20] sm:$0xff]  ;;  %v680_v32 = vld [vmem:[%s1473_s17 + $0x38] sm:$0xff]  ;;  %vm1036_vm7 = vcmask 23552   ;;  %vm1079_vm8 = vcmask 31744  }
  0xf9   : > { %v678_v24 = vld [vmem:[%s1473_s17 + $0x28] sm:$0xff]  ;;  %v679_v33 = vld [vmem:[%s1473_s17 + $0x30] sm:$0xff]  ;;  %v681_v35 = vld [vmem:[%s1473_s17 + $0x40] sm:$0xff] }
  0xfa   : > { %v682_v34 = vld [vmem:[%s1473_s17 + $0x48] sm:$0xff]  ;;  %v684_v36 = vld [vmem:[%s1473_s17 + $0x58] sm:$0xff]  ;;  %v683_v37 = vld [vmem:[%s1473_s17 + $0x50] sm:$0xff] }
  0xfb   : > { %v686_v38 = vld [vmem:[%s1473_s17 + $0x68] sm:$0xff]  ;;  %v685_v43 = vld [vmem:[%s1473_s17 + $0x60] sm:$0xff]  ;;  %v688_v44 = vld [vmem:[%s1473_s17 + $0x78] sm:$0xff] }
  0xfc   : > { %v687_v45 = vld [vmem:[%s1473_s17 + $0x70] sm:$0xff]  ;;  %v759_v52 = vld [vmem:[%s1468_s14 + $0x8] sm:$0xff]  ;;  %v758_v58 = vld [vmem:[%s1468_s14] sm:$0xff] }
  0xfd   : > { %v1512_v15 = vld [vmem:[#allocation2] ss:$0 sm:$0xff]  ;;  %v1549_v51 = vld [vmem:[#allocation2 + $0x1] ss:$0 sm:$0xff]  ;;  %v761_v59 = vld [vmem:[%s1468_s14 + $0x18] sm:$0xff] }
  0xfe   : > { %v695_v18 = vmul.f32 %v1512_v15, %v675_v16  ;;  %v693_v19 = vmul.f32 %v1512_v15, %v673_v17  ;;  %v696_v22 = vmul.f32 %v1512_v15, %v676_v20  ;;  %v694_v23 = vmul.f32 %v1512_v15, %v674_v21  ;;  %v760_v63 = vld [vmem:[%s1468_s14 + $0x10] sm:$0xff]  ;;  %v843_v0 = vld [vmem:[%s1483_s23 + $0x8] sm:$0xff]  ;;  %v842_v1 = vld [vmem:[%s1483_s23] sm:$0xff] }
  0xff   : > { %v698_v30 = vmul.f32 %v1512_v15, %v678_v24  ;;  %v697_v31 = vmul.f32 %v1512_v15, %v677_v25  ;;  %v700_v41 = vmul.f32 %v1512_v15, %v680_v32  ;;  %v699_v42 = vmul.f32 %v1512_v15, %v679_v33  ;;  %v845_v5 = vld [vmem:[%s1483_s23 + $0x18] sm:$0xff]  ;;  %v844_v6 = vld [vmem:[%s1483_s23 + $0x10] sm:$0xff]  ;;  %v847_v7 = vld [vmem:[%s1483_s23 + $0x28] sm:$0xff] }
 0x100   : > { %v716_v26 = vsel %vm709_vm4, %v695_v18, 0.0  ;;  %v710_v27 = vsel %vm709_vm4, %v693_v19, 0.0  ;;  %v719_v28 = vsel %vm709_vm4, %v696_v22, 0.0  ;;  %v713_v29 = vsel %vm709_vm4, %v694_v23, 0.0  ;;  %v846_v12 = vld [vmem:[%s1483_s23 + $0x20] sm:$0xff]  ;;  %v849_v13 = vld [vmem:[%s1483_s23 + $0x38] sm:$0xff] }
 0x101   : > { %717 = vadd.xlane.f32.xlu1 %v716_v26  ;;  %711 = vadd.xlane.f32.xlu0 %v710_v27  ;;  %v725_v39 = vsel %vm709_vm4, %v698_v30, 0.0  ;;  %v722_v40 = vsel %vm709_vm4, %v697_v31, 0.0  ;;  %v702_v46 = vmul.f32 %v1512_v15, %v682_v34  ;;  %v701_v47 = vmul.f32 %v1512_v15, %v681_v35  ;;  %v848_v19 = vld [vmem:[%s1483_s23 + $0x30] sm:$0xff]  ;;  %v851_v24 = vld [vmem:[%s1483_s23 + $0x48] sm:$0xff]  ;;  %v850_v25 = vld [vmem:[%s1483_s23 + $0x40] sm:$0xff] }
 0x102   : > { %v704_v48 = vmul.f32 %v1512_v15, %v684_v36  ;;  %v703_v49 = vmul.f32 %v1512_v15, %v683_v37  ;;  %v706_v50 = vmul.f32 %v1512_v15, %v686_v38  ;;  %v705_v53 = vmul.f32 %v1512_v15, %v685_v43  ;;  %v853_v30 = vld [vmem:[%s1483_s23 + $0x58] sm:$0xff]  ;;  %v852_v31 = vld [vmem:[%s1483_s23 + $0x50] sm:$0xff]  ;;  %v855_v32 = vld [vmem:[%s1483_s23 + $0x68] sm:$0xff] }
 0x103   : > { %v708_v54 = vmul.f32 %v1512_v15, %v688_v44  ;;  %v707_v55 = vmul.f32 %v1512_v15, %v687_v45  ;;  %v731_v56 = vsel %vm709_vm4, %v700_v41, 0.0  ;;  %v728_v57 = vsel %vm709_vm4, %v699_v42, 0.0  ;;  %v854_v37 = vld [vmem:[%s1483_s23 + $0x60] sm:$0xff]  ;;  %v857_v38 = vld [vmem:[%s1483_s23 + $0x78] sm:$0xff]  ;;  %v856_v43 = vld [vmem:[%s1483_s23 + $0x70] sm:$0xff] }
 0x104   : > { %v737_v60 = vsel %vm709_vm4, %v702_v46, 0.0  ;;  %v734_v61 = vsel %vm709_vm4, %v701_v47, 0.0  ;;  %v779_v62 = vmul.f32 %v1549_v51, %v759_v52  ;;  %v743_v2 = vsel %vm709_vm4, %v704_v48, 0.0  ;;  %v923_v48 = vld [vmem:[%s1478_s20 + $0x8] sm:$0xff] }
 0x105   : > { %720 = vadd.xlane.f32.xlu1 %v719_v28  ;;  %714 = vadd.xlane.f32.xlu0 %v713_v29  ;;  %v740_v3 = vsel %vm709_vm4, %v703_v49, 0.0  ;;  %v1568_v4 = vsel %vm709_vm4, %v706_v50, 0.0  ;;  %v1574_v8 = vsel %vm709_vm4, %v705_v53, 0.0  ;;  %v1577_v9 = vsel %vm709_vm4, %v708_v54, 0.0  ;;  %v922_v49 = vld [vmem:[%s1478_s20] sm:$0xff] }
 0x106   : > { %v1580_v10 = vsel %vm709_vm4, %v707_v55, 0.0  ;;  %v1583_v11 = vmul.f32 %v1549_v51, %v758_v58  ;;  %v1588_v14 = vmul.f32 %v1549_v51, %v761_v59  ;;  %v1591_v16 = vmul.f32 %v1549_v51, %v760_v63  ;;  %v925_v55 = vld [vmem:[%s1478_s20 + $0x18] sm:$0xff] }
 0x107   : > { %v859_v17 = vmul.f32 %v1512_v15, %v843_v0  ;;  %v858_v18 = vmul.f32 %v1512_v15, %v842_v1  ;;  %v1597_v20 = vsel %vm709_vm4, %v779_v62, 0.0  ;;  %v861_v21 = vmul.f32 %v1512_v15, %v845_v5  ;;  %v926_v62 = vld [vmem:[%s1478_s20 + $0x20] sm:$0xff]  ;;  %v929_v63 = vld [vmem:[%s1478_s20 + $0x38] sm:$0xff]  ;;  %v928_v5 = vld [vmem:[%s1478_s20 + $0x30] sm:$0xff] }
 0x108   : > { %v860_v22 = vmul.f32 %v1512_v15, %v844_v6  ;;  %v863_v23 = vmul.f32 %v1512_v15, %v847_v7  ;;  %v862_v28 = vmul.f32 %v1512_v15, %v846_v12  ;;  %v865_v29 = vmul.f32 %v1512_v15, %v849_v13  ;;  %v931_v13 = vld [vmem:[%s1478_s20 + $0x48] sm:$0xff] }
 0x109   : > { %726 = vadd.xlane.f32.xlu1 %v725_v39  ;;  %723 = vadd.xlane.f32.xlu0 %v722_v40  ;;  %v1605_v26 = vsel %vm709_vm4, %v859_v17, 0.0  ;;  %v1608_v27 = vsel %vm709_vm4, %v858_v18, 0.0  ;;  %v1616_v33 = vsel %vm709_vm4, %v861_v21, 0.0  ;;  %v864_v36 = vmul.f32 %v1512_v15, %v848_v19  ;;  %v930_v17 = vld [vmem:[%s1478_s20 + $0x40] sm:$0xff] }
 0x10a   : > { %v1619_v34 = vsel %vm709_vm4, %v860_v22, 0.0  ;;  %v1622_v35 = vsel %vm709_vm4, %v863_v23, 0.0  ;;  %v1628_v39 = vsel %vm709_vm4, %v862_v28, 0.0  ;;  %v1631_v40 = vsel %vm709_vm4, %v865_v29, 0.0  ;;  %v933_v23 = vld [vmem:[%s1478_s20 + $0x58] sm:$0xff] }
 0x10b   : > { %v867_v41 = vmul.f32 %v1512_v15, %v851_v24  ;;  %v866_v42 = vmul.f32 %v1512_v15, %v850_v25  ;;  %v1637_v44 = vsel %vm709_vm4, %v864_v36, 0.0  ;;  %v869_v45 = vmul.f32 %v1512_v15, %v853_v30  ;;  %v932_v24 = vld [vmem:[%s1478_s20 + $0x50] sm:$0xff]  ;;  %v935_v25 = vld [vmem:[%s1478_s20 + $0x68] sm:$0xff]  ;;  %v937_v36 = vld [vmem:[%s1478_s20 + $0x78] sm:$0xff] }
 0x10c   : > { %v868_v46 = vmul.f32 %v1512_v15, %v852_v31  ;;  %v871_v47 = vmul.f32 %v1512_v15, %v855_v32  ;;  %v870_v53 = vmul.f32 %v1512_v15, %v854_v37  ;;  %v873_v54 = vmul.f32 %v1512_v15, %v857_v38  ;;  %v934_v32 = vld [vmem:[%s1478_s20 + $0x60] sm:$0xff] }
 0x10d   : > { %732 = vadd.xlane.f32.xlu1 %v731_v56  ;;  %729 = vadd.xlane.f32.xlu0 %v728_v57  ;;  %v1645_v50 = vsel %vm709_vm4, %v867_v41, 0.0  ;;  %v1648_v52 = vsel %vm709_vm4, %v866_v42, 0.0  ;;  %v924_v56 = vld [vmem:[%s1478_s20 + $0x10] sm:$0xff]  ;;  %v927_v57 = vld [vmem:[%s1478_s20 + $0x28] sm:$0xff]  ;;  %v1656_v58 = vsel %vm709_vm4, %v869_v45, 0.0  ;;  %v942_v21 = vmul.f32 %v1549_v51, %v926_v62 }
 0x10e   : > { %v1659_v59 = vsel %vm709_vm4, %v868_v46, 0.0  ;;  %v1668_v0 = vsel %vm709_vm4, %v870_v53, 0.0  ;;  %v1671_v1 = vsel %vm709_vm4, %v873_v54, 0.0  ;;  %v940_v7 = vmul.f32 %v1549_v51, %v924_v56  ;;  %v936_v41 = vld [vmem:[%s1478_s20 + $0x70] sm:$0xff]  ;;  %v763_v62 = vld [vmem:[%s1468_s14 + $0x28] sm:$0xff] }
 0x10f   : > { %v943_v12 = vmul.f32 %v1549_v51, %v927_v57  ;;  %v945_v22 = vmul.f32 %v1549_v51, %v929_v63  ;;  %v944_v31 = vmul.f32 %v1549_v51, %v928_v5  ;;  %v1710_v37 = vsel %vm709_vm4, %v942_v21, 0.0  ;;  %v762_v63 = vld [vmem:[%s1468_s14 + $0x20] sm:$0xff] }
 0x110   : > { %v1701_v29 = vsel %vm709_vm4, %v940_v7, 0.0  ;;  %v946_v38 = vmul.f32 %v1549_v51, %v930_v17  ;;  %v948_v45 = vmul.f32 %v1549_v51, %v932_v24  ;;  %v951_v46 = vmul.f32 %v1549_v51, %v935_v25 }
 0x111   : > { %738 = vadd.xlane.f32.xlu1 %v737_v60  ;;  %735 = vadd.xlane.f32.xlu0 %v734_v61  ;;  %v1662_v60 = vsel %vm709_vm4, %v871_v47, 0.0  ;;  %v872_v61 = vmul.f32 %v1512_v15, %v856_v43  ;;  %v941_v15 = vmul.f32 %v1549_v51, %v925_v55  ;;  %v1704_v30 = vsel %vm709_vm4, %v943_v12, 0.0  ;;  %v765_v12 = vld [vmem:[%s1468_s14 + $0x38] sm:$0xff] }
 0x112   : > { %v1719_v42 = vsel %vm709_vm4, %v944_v31, 0.0  ;;  %v949_v43 = vmul.f32 %v1549_v51, %v933_v23  ;;  %v953_v53 = vmul.f32 %v1549_v51, %v937_v36  ;;  %v1738_v55 = vsel %vm709_vm4, %v948_v45, 0.0  ;;  %v768_v36 = vld [vmem:[%s1468_s14 + $0x50] sm:$0xff]  ;;  %v771_v45 = vld [vmem:[%s1468_s14 + $0x68] sm:$0xff] }
 0x113   : > { %v1677_v6 = vsel %vm709_vm4, %v872_v61, 0.0  ;;  %v1698_v28 = vsel %vm709_vm4, %v941_v15, 0.0  ;;  %v1741_v56 = vsel %vm709_vm4, %v951_v46, 0.0  ;;  %v952_v57 = vmul.f32 %v1549_v51, %v936_v41  ;;  %v770_v46 = vld [vmem:[%s1468_s14 + $0x60] sm:$0xff] }
 0x114   : > { %v1735_v54 = vsel %vm709_vm4, %v949_v43, 0.0  ;;  %v794_v61 = vsel %vm709_vm4, %v1583_v11, 0.0  ;;  %v803_v11 = vsel %vm709_vm4, %v1588_v14, 0.0  ;;  %v800_v5 = vsel %vm709_vm4, %v1591_v16, 0.0  ;;  %v766_v16 = vld [vmem:[%s1468_s14 + $0x40] sm:$0xff] }
 0x115   : > { %744 = vadd.xlane.f32.xlu1 %v743_v2  ;;  %741 = vadd.xlane.f32.xlu0 %v740_v3  ;;  %v939_v2 = vmul.f32 %v1549_v51, %v923_v48  ;;  %v938_v3 = vmul.f32 %v1549_v51, %v922_v49  ;;  %v1728_v48 = vsel %vm709_vm4, %v946_v38, 0.0  ;;  %v950_v49 = vmul.f32 %v1549_v51, %v934_v32  ;;  %v769_v32 = vld [vmem:[%s1468_s14 + $0x58] sm:$0xff] }
 0x116   : > { %v783_v15 = vmul.f32 %v1549_v51, %v763_v62  ;;  %v782_v7 = vmul.f32 %v1549_v51, %v762_v63  ;;  %v785_v21 = vmul.f32 %v1549_v51, %v765_v12  ;;  %v786_v31 = vmul.f32 %v1549_v51, %v766_v16  ;;  %v773_v62 = vld [vmem:[%s1468_s14 + $0x78] sm:$0xff]  ;;  %v772_v63 = vld [vmem:[%s1468_s14 + $0x70] sm:$0xff] }
 0x117   : > { %v1685_v18 = vsel %vm709_vm4, %v939_v2, 0.0  ;;  %v1688_v19 = vsel %vm709_vm4, %v938_v3, 0.0  ;;  %v1755_v2 = vsel %vm709_vm4, %v952_v57, 0.0  ;;  %v1398_v3 = vmov 0  }
 0x118   : > { %1370 = vset.pattern.permute.xlu0 %v1398_v3  ;;  %v809_v17 = vsel %vm709_vm4, %v783_v15, 0.0  ;;  %v815_v23 = vsel %vm709_vm4, %v785_v21, 0.0  ;;  %v818_v38 = vsel %vm709_vm4, %v786_v31, 0.0  ;;  %v789_v41 = vmul.f32 %v1549_v51, %v769_v32 }
 0x119   : > { %750 = vadd.xlane.f32.xlu1 %v1568_v4  ;;  %747 = vadd.xlane.f32.xlu0 %v1574_v8  ;;  %v1713_v4 = vsel %vm709_vm4, %v945_v22, 0.0  ;;  %v947_v8 = vmul.f32 %v1549_v51, %v931_v13  ;;  %v764_v13 = vld [vmem:[%s1468_s14 + $0x30] sm:$0xff]  ;;  %v767_v22 = vld [vmem:[%s1468_s14 + $0x48] sm:$0xff]  ;;  %v788_v43 = vmul.f32 %v1549_v51, %v768_v36  ;;  %v791_v57 = vmul.f32 %v1549_v51, %v771_v45 }
 0x11a   : > { %v784_v14 = vmul.f32 %v1549_v51, %v764_v13  ;;  %v787_v25 = vmul.f32 %v1549_v51, %v767_v22  ;;  %v792_v15 = vmul.f32 %v1549_v51, %v772_v63 }
 0x11b   : > { %v1725_v47 = vsel %vm709_vm4, %v947_v8, 0.0  ;;  %v833_v3 = vsel %vm709_vm4, %v791_v57, 0.0 }
 0x11c   : > { %v812_v24 = vsel %vm709_vm4, %v784_v14, 0.0  ;;  %v821_v8 = vsel %vm709_vm4, %v787_v25, 0.0  ;;  %v836_v12 = vsel %vm709_vm4, %v792_v15, 0.0 }
 0x11d   : > { %756 = vadd.xlane.f32.xlu1 %v1577_v9  ;;  %753 = vadd.xlane.f32.xlu0 %v1580_v10  ;;  %v1747_v9 = vsel %vm709_vm4, %v950_v49, 0.0  ;;  %v1750_v10 = vsel %vm709_vm4, %v953_v53, 0.0  ;;  %v827_v49 = vsel %vm709_vm4, %v789_v41, 0.0  ;;  %v824_v53 = vsel %vm709_vm4, %v788_v43, 0.0 }
 0x121   : > { %798 = vadd.xlane.f32.xlu1 %v1597_v20  ;;  %795 = vadd.xlane.f32.xlu0 %v794_v61  ;;  %v806_v20 = vsel %vm709_vm4, %v782_v7, 0.0  ;;  %v790_v61 = vmul.f32 %v1549_v51, %v770_v46 }
 0x125   : > { %804 = vadd.xlane.f32.xlu1 %v803_v11  ;;  %801 = vadd.xlane.f32.xlu0 %v800_v5  ;;  %v830_v11 = vsel %vm709_vm4, %v790_v61, 0.0  ;;  %v793_v5 = vmul.f32 %v1549_v51, %v773_v62 }
 0x127   : > { %v839_v7 = vsel %vm709_vm4, %v793_v5, 0.0 }
 0x129   : > { %810 = vadd.xlane.f32.xlu1 %v809_v17  ;;  %807 = vadd.xlane.f32.xlu0 %v806_v20 }
 0x12d   : > { %816 = vadd.xlane.f32.xlu1 %v815_v23  ;;  %813 = vadd.xlane.f32.xlu0 %v812_v24 }
 0x131   : > { %822 = vadd.xlane.f32.xlu1 %v821_v8  ;;  %819 = vadd.xlane.f32.xlu0 %v818_v38 }
 0x135   : > { %828 = vadd.xlane.f32.xlu1 %v827_v49  ;;  %825 = vadd.xlane.f32.xlu0 %v824_v53 }
 0x139   : > { %834 = vadd.xlane.f32.xlu1 %v833_v3  ;;  %831 = vadd.xlane.f32.xlu0 %v830_v11 }
 0x13d   : > { %840 = vadd.xlane.f32.xlu1 %v839_v7  ;;  %837 = vadd.xlane.f32.xlu0 %v836_v12 }
 0x141   : > { %878 = vadd.xlane.f32.xlu1 %v1605_v26  ;;  %875 = vadd.xlane.f32.xlu0 %v1608_v27  ;;  %v1291_v27 = vld [vmem:[#allocation3] ss:$0 sm:$0xff] }
 0x145   : > { %884 = vadd.xlane.f32.xlu1 %v1616_v33  ;;  %881 = vadd.xlane.f32.xlu0 %v1619_v34 }
 0x149   : > { %890 = vadd.xlane.f32.xlu1 %v1622_v35  ;;  %887 = vadd.xlane.f32.xlu0 %v1628_v39 }
 0x14d   : > { %896 = vadd.xlane.f32.xlu1 %v1631_v40  ;;  %893 = vadd.xlane.f32.xlu0 %v1637_v44 }
 0x151   : > { %902 = vadd.xlane.f32.xlu1 %v1645_v50  ;;  %899 = vadd.xlane.f32.xlu0 %v1648_v52 }
 0x155   : > { %908 = vadd.xlane.f32.xlu1 %v1656_v58  ;;  %905 = vadd.xlane.f32.xlu0 %v1659_v59 }
 0x159   : > { %914 = vadd.xlane.f32.xlu1 %v1662_v60  ;;  %911 = vadd.xlane.f32.xlu0 %v1668_v0 }
 0x15d   : > { %920 = vadd.xlane.f32.xlu1 %v1671_v1  ;;  %917 = vadd.xlane.f32.xlu0 %v1677_v6 }
 0x161   : > { %958 = vadd.xlane.f32.xlu1 %v1685_v18  ;;  %955 = vadd.xlane.f32.xlu0 %v1688_v19 }
 0x165   : > { %964 = vadd.xlane.f32.xlu1 %v1698_v28  ;;  %961 = vadd.xlane.f32.xlu0 %v1701_v29 }
 0x169   : > { %970 = vadd.xlane.f32.xlu1 %v1704_v30  ;;  %967 = vadd.xlane.f32.xlu0 %v1710_v37 }
 0x16d   : > { %976 = vadd.xlane.f32.xlu1 %v1713_v4  ;;  %973 = vadd.xlane.f32.xlu0 %v1719_v42 }
 0x171   : > { %982 = vadd.xlane.f32.xlu1 %v1725_v47  ;;  %979 = vadd.xlane.f32.xlu0 %v1728_v48 }
 0x175   : > { %988 = vadd.xlane.f32.xlu1 %v1735_v54  ;;  %985 = vadd.xlane.f32.xlu0 %v1738_v55 }
 0x179   : > { %994 = vadd.xlane.f32.xlu1 %v1741_v56  ;;  %991 = vadd.xlane.f32.xlu0 %v1747_v9 }
 0x17d   : > { %1000 = vadd.xlane.f32.xlu1 %v1750_v10  ;;  %997 = vadd.xlane.f32.xlu0 %v1755_v2 }
 0x18e   : > { %v718_v51 = vpop.xlane.xlu1 %717  ;;  %v712_v26 = vpop.xlane.xlu0 %711 }
 0x192   : > { %v721_v33 = vpop.xlane.xlu1 %720  ;;  %v715_v34 = vpop.xlane.xlu0 %714 }
 0x193   : > { %1060 = vperm.xlu0 %1370, %v1291_v27  }
 0x196   : > { %v727_v35 = vpop.xlane.xlu1 %726  ;;  %v724_v39 = vpop.xlane.xlu0 %723 }
 0x19a   : > { %v733_v40 = vpop.xlane.xlu1 %732  ;;  %v730_v44 = vpop.xlane.xlu0 %729 }
 0x19e   : > { %v739_v50 = vpop.xlane.xlu1 %738  ;;  %v736_v52 = vpop.xlane.xlu0 %735 }
 0x1a2   : > { %v745_v58 = vpop.xlane.xlu1 %744  ;;  %v742_v59 = vpop.xlane.xlu0 %741 }
 0x1a6   : > { %v751_v60 = vpop.xlane.xlu1 %750  ;;  %v748_v0 = vpop.xlane.xlu0 %747 }
 0x1aa   : > { %v1828_v1 = vpop.xlane.xlu1 %756  ;;  %v754_v6 = vpop.xlane.xlu0 %753 }
 0x1ae   : > { %v799_v18 = vpop.xlane.xlu1 %798  ;;  %v796_v19 = vpop.xlane.xlu0 %795 }
 0x1af   : > { %v1831_v28 = vsel %vm1002_vm5, %v715_v34, %v799_v18  ;;  %v1834_v29 = vsel %vm1002_vm5, %v712_v26, %v796_v19 }
 0x1b2   : > { %v805_v30 = vpop.xlane.xlu1 %804  ;;  %v802_v37 = vpop.xlane.xlu0 %801 }
 0x1b3   : > { %v1006_v4 = vsel %vm1002_vm5, %v721_v33, %v805_v30  ;;  %v1005_v42 = vsel %vm1002_vm5, %v718_v51, %v802_v37 }
 0x1b6   : > { %v811_v47 = vpop.xlane.xlu1 %810  ;;  %v808_v48 = vpop.xlane.xlu0 %807 }
 0x1b7   : > { %v1008_v54 = vsel %vm1002_vm5, %v727_v35, %v811_v47  ;;  %v1007_v55 = vsel %vm1002_vm5, %v724_v39, %v808_v48 }
 0x1ba   : > { %v817_v56 = vpop.xlane.xlu1 %816  ;;  %v814_v9 = vpop.xlane.xlu0 %813 }
 0x1bb   : > { %v1010_v10 = vsel %vm1002_vm5, %v733_v40, %v817_v56  ;;  %v1009_v2 = vsel %vm1002_vm5, %v730_v44, %v814_v9 }
 0x1be   : > { %v823_v13 = vpop.xlane.xlu1 %822  ;;  %v820_v17 = vpop.xlane.xlu0 %819 }
 0x1bf   : > { %v1012_v20 = vsel %vm1002_vm5, %v739_v50, %v823_v13  ;;  %v1011_v21 = vsel %vm1002_vm5, %v736_v52, %v820_v17 }
 0x1c2   : > { %v829_v14 = vpop.xlane.xlu1 %828  ;;  %v826_v22 = vpop.xlane.xlu0 %825 }
 0x1c3   : > { %v1014_v16 = vsel %vm1002_vm5, %v745_v58, %v829_v14  ;;  %v1013_v23 = vsel %vm1002_vm5, %v742_v59, %v826_v22 }
 0x1c6   : > { %v835_v24 = vpop.xlane.xlu1 %834  ;;  %v832_v25 = vpop.xlane.xlu0 %831 }
 0x1c7   : > { %v1016_v31 = vsel %vm1002_vm5, %v751_v60, %v835_v24  ;;  %v1015_v32 = vsel %vm1002_vm5, %v748_v0, %v832_v25 }
 0x1ca   : > { %v841_v36 = vpop.xlane.xlu1 %840  ;;  %v838_v8 = vpop.xlane.xlu0 %837 }
 0x1cb   : > { %v1017_v38 = vsel %vm1002_vm5, %v754_v6, %v838_v8  ;;  %v1018_v0 = vsel %vm1002_vm5, %v1828_v1, %v841_v36 }
 0x1ce   : > { %v879_v41 = vpop.xlane.xlu1 %878  ;;  %v876_v43 = vpop.xlane.xlu0 %875 }
 0x1cf   : > { %v1021_v6 = vsel %vm1019_vm6, %v1831_v28, %v879_v41  ;;  %v1020_v18 = vsel %vm1019_vm6, %v1834_v29, %v876_v43 }
 0x1d2   : > { %v885_v45 = vpop.xlane.xlu1 %884  ;;  %v882_v46 = vpop.xlane.xlu0 %881 }
 0x1d3   : > { %v1023_v19 = vsel %vm1019_vm6, %v1006_v4, %v885_v45  ;;  %v1022_v30 = vsel %vm1019_vm6, %v1005_v42, %v882_v46 }
 0x1d6   : > { %v891_v49 = vpop.xlane.xlu1 %890  ;;  %v888_v53 = vpop.xlane.xlu0 %887 }
 0x1d7   : > { %v1025_v37 = vsel %vm1019_vm6, %v1008_v54, %v891_v49  ;;  %v1024_v47 = vsel %vm1019_vm6, %v1007_v55, %v888_v53 }
 0x1da   : > { %v897_v57 = vpop.xlane.xlu1 %896  ;;  %v894_v61 = vpop.xlane.xlu0 %893 }
 0x1db   : > { %v1027_v48 = vsel %vm1019_vm6, %v1010_v10, %v897_v57  ;;  %v1026_v1 = vsel %vm1019_vm6, %v1009_v2, %v894_v61 }
 0x1de   : > { %v903_v62 = vpop.xlane.xlu1 %902  ;;  %v900_v63 = vpop.xlane.xlu0 %899 }
 0x1df   : > { %v1029_v56 = vsel %vm1019_vm6, %v1012_v20, %v903_v62  ;;  %v1028_v9 = vsel %vm1019_vm6, %v1011_v21, %v900_v63 }
 0x1e2   : > { %v909_v3 = vpop.xlane.xlu1 %908  ;;  %v906_v11 = vpop.xlane.xlu0 %905 }
 0x1e3   : > { %v1031_v28 = vsel %vm1019_vm6, %v1014_v16, %v909_v3  ;;  %v1030_v29 = vsel %vm1019_vm6, %v1013_v23, %v906_v11 }
 0x1e6   : > { %v915_v5 = vpop.xlane.xlu1 %914  ;;  %v912_v15 = vpop.xlane.xlu0 %911 }
 0x1e7   : > { %v1033_v4 = vsel %vm1019_vm6, %v1016_v31, %v915_v5  ;;  %v1032_v42 = vsel %vm1019_vm6, %v1015_v32, %v912_v15 }
 0x1ea   : > { %v921_v7 = vpop.xlane.xlu1 %920  ;;  %v918_v12 = vpop.xlane.xlu0 %917 }
 0x1eb   : > { %v1035_v54 = vsel %vm1019_vm6, %v1018_v0, %v921_v7  ;;  %v1034_v55 = vsel %vm1019_vm6, %v1017_v38, %v918_v12 }
 0x1ee   : > { %v959_v51 = vpop.xlane.xlu1 %958  ;;  %v956_v26 = vpop.xlane.xlu0 %955 }
 0x1ef   : > { %v1038_v10 = vsel %vm1036_vm7, %v1021_v6, %v959_v51  ;;  %v1037_v2 = vsel %vm1036_vm7, %v1020_v18, %v956_v26 }
 0x1f2   : > { %v965_v27 = vpop.xlane.xlu1 %964  ;;  %v962_v33 = vpop.xlane.xlu0 %961 }
 0x1f3   : > { %v1040_v17 = vsel %vm1036_vm7, %v1023_v19, %v965_v27  ;;  %v1039_v20 = vsel %vm1036_vm7, %v1022_v30, %v962_v33 }
 0x1f6   : > { %v971_v34 = vpop.xlane.xlu1 %970  ;;  %v968_v35 = vpop.xlane.xlu0 %967 }
 0x1f7   : > { %v1042_v14 = vsel %vm1036_vm7, %v1025_v37, %v971_v34  ;;  %v1041_v22 = vsel %vm1036_vm7, %v1024_v47, %v968_v35 }
 0x1fa   : > { %v977_v39 = vpop.xlane.xlu1 %976  ;;  %v974_v40 = vpop.xlane.xlu0 %973 }
 0x1fb   : > { %v1044_v16 = vsel %vm1036_vm7, %v1027_v48, %v977_v39  ;;  %v1043_v23 = vsel %vm1036_vm7, %v1026_v1, %v974_v40 }
 0x1fe   : > { %v983_v44 = vpop.xlane.xlu1 %982  ;;  %v980_v50 = vpop.xlane.xlu0 %979 }
 0x1ff   : > { %v1046_v24 = vsel %vm1036_vm7, %v1029_v56, %v983_v44  ;;  %v1045_v25 = vsel %vm1036_vm7, %v1028_v9, %v980_v50 }
 0x202   : > { %v986_v52 = vpop.xlane.xlu0 %985  ;;  %v989_v58 = vpop.xlane.xlu1 %988 }
 0x203   : > { %v1048_v31 = vsel %vm1036_vm7, %v1031_v28, %v989_v58  ;;  %v1047_v32 = vsel %vm1036_vm7, %v1030_v29, %v986_v52 }
 0x206   : > { %v992_v59 = vpop.xlane.xlu0 %991  ;;  %v995_v60 = vpop.xlane.xlu1 %994 }
 0x207   : > { %v1050_v36 = vsel %vm1036_vm7, %v1033_v4, %v995_v60  ;;  %v1049_v8 = vsel %vm1036_vm7, %v1032_v42, %v992_v59 }
 0x20a   : > { %v998_v13 = vpop.xlane.xlu0 %997  ;;  %v1001_v21 = vpop.xlane.xlu1 %1000 }
 0x20b   : > { %v1052_v38 = vsel %vm1036_vm7, %v1035_v54, %v1001_v21  ;;  %v1051_v41 = vsel %vm1036_vm7, %v1034_v55, %v998_v13 }
 0x212   : > { %v1061_v43 = vpop.permute.xlu0 %1060 }
 0x213   : > { %v1063_v45 = vadd.f32 %v1061_v43, %v1037_v2  ;;  %v1064_v46 = vadd.f32 %v1061_v43, %v1038_v10  ;;  %v1065_v49 = vadd.f32 %v1061_v43, %v1039_v20  ;;  %v1066_v53 = vadd.f32 %v1061_v43, %v1040_v17 }
 0x214   : > { %v1067_v57 = vadd.f32 %v1061_v43, %v1041_v22  ;;  %v1068_v61 = vadd.f32 %v1061_v43, %v1042_v14  ;;  %v1069_v62 = vadd.f32 %v1061_v43, %v1043_v23  ;;  %v1070_v63 = vadd.f32 %v1061_v43, %v1044_v16 }
 0x215   : > { %v1071_v3 = vadd.f32 %v1061_v43, %v1045_v25  ;;  %v1072_v11 = vadd.f32 %v1061_v43, %v1046_v24  ;;  %v1073_v5 = vadd.f32 %v1061_v43, %v1047_v32  ;;  %v1074_v15 = vadd.f32 %v1061_v43, %v1048_v31  ;;  %1080 = vst.msk [vmem:[%s1488_s26] sm:$0xff] %vm1079_vm8, %v1063_v45 }
 0x216   : > { %1081 = vst.msk [vmem:[%s1488_s26 + $0x8] sm:$0xff] %vm1079_vm8, %v1064_v46  ;;  %1082 = vst.msk [vmem:[%s1488_s26 + $0x10] sm:$0xff] %vm1079_vm8, %v1065_v49  ;;  %v1075_v7 = vadd.f32 %v1061_v43, %v1049_v8  ;;  %v1076_v12 = vadd.f32 %v1061_v43, %v1050_v36  ;;  %v1077_v51 = vadd.f32 %v1061_v43, %v1051_v41 }
 0x217   : > { %1083 = vst.msk [vmem:[%s1488_s26 + $0x18] sm:$0xff] %vm1079_vm8, %v1066_v53  ;;  %v1078_v26 = vadd.f32 %v1061_v43, %v1052_v38  ;;  %1084 = vst.msk [vmem:[%s1488_s26 + $0x20] sm:$0xff] %vm1079_vm8, %v1067_v57 }
 0x218   : > { %1085 = vst.msk [vmem:[%s1488_s26 + $0x28] sm:$0xff] %vm1079_vm8, %v1068_v61  ;;  %1086 = vst.msk [vmem:[%s1488_s26 + $0x30] sm:$0xff] %vm1079_vm8, %v1069_v62 }
 0x219   : > { %1087 = vst.msk [vmem:[%s1488_s26 + $0x38] sm:$0xff] %vm1079_vm8, %v1070_v63  ;;  %1088 = vst.msk [vmem:[%s1488_s26 + $0x40] sm:$0xff] %vm1079_vm8, %v1071_v3 }
 0x21a   : > { %1089 = vst.msk [vmem:[%s1488_s26 + $0x48] sm:$0xff] %vm1079_vm8, %v1072_v11  ;;  %1090 = vst.msk [vmem:[%s1488_s26 + $0x50] sm:$0xff] %vm1079_vm8, %v1073_v5 }
 0x21b   : > { %1091 = vst.msk [vmem:[%s1488_s26 + $0x58] sm:$0xff] %vm1079_vm8, %v1074_v15  ;;  %1092 = vst.msk [vmem:[%s1488_s26 + $0x60] sm:$0xff] %vm1079_vm8, %v1075_v7 }
 0x21c   : > { %1093 = vst.msk [vmem:[%s1488_s26 + $0x68] sm:$0xff] %vm1079_vm8, %v1076_v12  ;;  %1094 = vst.msk [vmem:[%s1488_s26 + $0x70] sm:$0xff] %vm1079_vm8, %v1077_v51 }
 0x21d   : > { %1095 = vst.msk [vmem:[%s1488_s26 + $0x78] sm:$0xff] %vm1079_vm8, %v1078_v26 }
 0x21e PF: > { %s20_s9 = sadd.s32 1, %s1393_s9   ;;  %s1935_s29 = smov %s1389_s30 }
 0x21f   : > { %p17_p6 = scmp.ge.s32.totalorder %s20_s9, 4   ;;  %s1936_s30 = smov %s1938_s7 }
 0x221   :  { %19 = sbr.rel (!%p17_p6) target bundleno = 3 (0x3), region = 101 }

// kernel: _lambda_.19
= control target key start
LH: loop header
LB: loop body
LE: loop exit
PB: predicated region body
PF: predicated region fallthrough
CT: control target
= control target key end

     0   :  { %s453_s6 = smov 0   ;;  %s455_s7 = smov 0   ;;  %s562_s0 = inlined_call_operand.vmem [shape: f32[1,256,32], index: 0, kind: input, shape index: {}]   ;;  %s563_s1 = inlined_call_operand.vmem [shape: f32[1,1,32], index: 1, kind: output, shape index: {}]  }
   0x1   :  { %s457_s8 = smov 0  }
   0x2 LB: > { %s20_s9 = sadd.s32 1, %s436_s7  ;;  %p379_p0 = scmp.ge.s32.totalorder %s440_s8, 1  ;;  %s440_s8 = sphi %s457_s8, %s11_s8   ;;  %s436_s7 = sphi %s455_s7, %s565_s7   ;;  %s432_s6 = sphi %s453_s6, %s564_s6  }
   0x3   : > { %p21_p1 = scmp.ge.s32.totalorder %s20_s9, 2  ;;  %p106_p2 = scmp.lt.s32.totalorder %s440_s8, 3 }
   0x5   : > { %s567_s9 = smov (%p21_p1, %s20_s9), 0  ;;  %p107_p3 = pnand %p379_p0, %p106_p2 }
   0x6   : > { %s380_s10 = sshll.u32 (!%p107_p3), %s432_s6, 4  ;;  %p382_p5 = scmp.ne.s32.totalorder (!%p107_p3), %s432_s6, 0 }
   0x7   : > { %110 = sbr.rel (%p107_p3) target bundleno = 114 (0x72), region = 24  ;;  %p131_p4 = scmp.lt.s32.totalorder (!%p107_p3), %s380_s10, 31 }
   0xe   : > { %s569_s10 = smov (!%p131_p4, %s380_s10), 31  ;;  %144 = sbr.rel (%p382_p5) target bundleno = 21 (0x15), region = 28 }
   0xf   : > { %s381_s11 = sshll.u32 %s569_s10, 3  ;;  %vm145_vm0 = vcmask (!%p382_p5), 253952   ;;  %v442_v0 = vmov (!%p382_p5), 0.0  }
  0x10   : > { %s477_s14 = scalar_lea.vmem %s562_s0, %s381_s11  ;;  %146 = vst.msk [vmem:[#allocation2] sm:$0x1] (!%p382_p5), %vm145_vm0, %v442_v0 }
  0x15 PF: > { %v148_v1 = vlaneseq  ;;  %s383_s15 = sshll.u32 %s432_s6, 7  ;;  %v198_v13 = vld [vmem:[%s477_s14] sm:$0xff]  ;;  %v199_v16 = vld [vmem:[%s477_s14 + $0x8] sm:$0xff]  ;;  %v200_v17 = vld [vmem:[%s477_s14 + $0x10] sm:$0xff]  ;;  %vm263_vm4 = vcmask 261120   ;;  %p384_p6 = scmp.ne.s32.totalorder %s432_s6, 1 }
  0x16   : > { %v485_v5 = vstv %s383_s15  ;;  %v201_v20 = vld [vmem:[%s477_s14 + $0x18] sm:$0xff]  ;;  %v202_v26 = vld [vmem:[%s477_s14 + $0x20] sm:$0xff]  ;;  %v203_v31 = vld [vmem:[%s477_s14 + $0x28] sm:$0xff] }
  0x17   : > { %v480_v2 = vshrl.u32 %v148_v1, 7  ;;  %v204_v38 = vld [vmem:[%s477_s14 + $0x30] sm:$0xff]  ;;  %v205_v44 = vld [vmem:[%s477_s14 + $0x38] sm:$0xff]  ;;  %v206_v50 = vld [vmem:[%s477_s14 + $0x40] sm:$0xff] }
  0x18   : > { %v207_v56 = vld [vmem:[%s477_s14 + $0x48] sm:$0xff]  ;;  %v208_v62 = vld [vmem:[%s477_s14 + $0x50] sm:$0xff] }
  0x19   : > { %v150_v3 = vadd.s32 8, %v480_v2  ;;  %v151_v4 = vadd.s32 16, %v480_v2  ;;  %v152_v6 = vadd.s32 24, %v480_v2  ;;  %v166_v7 = vadd.s32 %v485_v5, %v480_v2 }
  0x1a   : > { %v153_v8 = vadd.s32 32, %v480_v2  ;;  %v154_v11 = vadd.s32 40, %v480_v2  ;;  %v155_v14 = vadd.s32 48, %v480_v2  ;;  %v156_v18 = vadd.s32 56, %v480_v2 }
  0x1b   : > { %v167_v9 = vadd.s32 %v485_v5, %v150_v3  ;;  %v168_v10 = vadd.s32 %v485_v5, %v151_v4  ;;  %v169_v12 = vadd.s32 %v485_v5, %v152_v6  ;;  %vm182_vm1 = vcmp.lt.s32.totalorder %v166_v7, 256  ;;  %v209_v6 = vld [vmem:[%s477_s14 + $0x58] sm:$0xff] }
  0x1c   : > { %v170_v15 = vadd.s32 %v485_v5, %v153_v8  ;;  %v171_v19 = vadd.s32 %v485_v5, %v154_v11  ;;  %v246_v21 = vsel %vm182_vm1, %v198_v13, 0.0  ;;  %v157_v24 = vadd.s32 64, %v480_v2  ;;  %v210_v11 = vld [vmem:[%s477_s14 + $0x60] sm:$0xff] }
  0x1d   : > { %vm183_vm2 = vcmp.lt.s32.totalorder %v167_v9, 256  ;;  %vm184_vm3 = vcmp.lt.s32.totalorder %v168_v10, 256  ;;  %vm185_vm5 = vcmp.lt.s32.totalorder %v169_v12, 256  ;;  %v172_v25 = vadd.s32 %v485_v5, %v155_v14 }
  0x1e   : > { %v247_v22 = vsel %vm183_vm2, %v199_v16, 0.0  ;;  %v248_v23 = vsel %vm184_vm3, %v200_v17, 0.0  ;;  %vm186_vm6 = vcmp.lt.s32.totalorder %v170_v15, 256  ;;  %v158_v27 = vadd.s32 72, %v480_v2  ;;  %v211_v15 = vld [vmem:[%s477_s14 + $0x68] sm:$0xff] }
  0x1f   : > { %v249_v28 = vsel %vm185_vm5, %v201_v20, 0.0  ;;  %v264_v29 = vsel %vm263_vm4, %v246_v21, 0.0  ;;  %v173_v30 = vadd.s32 %v485_v5, %v156_v18  ;;  %vm187_vm7 = vcmp.lt.s32.totalorder %v171_v19, 256  ;;  %v212_v19 = vld [vmem:[%s477_s14 + $0x70] sm:$0xff] }
  0x20   : > { %v265_v32 = vsel %vm263_vm4, %v247_v22, 0.0  ;;  %v267_v33 = vsel %vm263_vm4, %v248_v23, 0.0  ;;  %v250_v34 = vsel %vm186_vm6, %v202_v26, 0.0  ;;  %v159_v36 = vadd.s32 80, %v480_v2  ;;  %v213_v23 = vld [vmem:[%s477_s14 + $0x78] sm:$0xff] }
  0x21   : > { %v266_v35 = vadd.f32 %v265_v32, %v264_v29  ;;  %v174_v37 = vadd.s32 %v485_v5, %v157_v24  ;;  %vm188_vm8 = vcmp.lt.s32.totalorder %v172_v25, 256  ;;  %v269_v39 = vsel %vm263_vm4, %v249_v28, 0.0 }
  0x22   : > { %v251_v40 = vsel %vm187_vm7, %v203_v31, 0.0  ;;  %v160_v42 = vadd.s32 88, %v480_v2  ;;  %v175_v43 = vadd.s32 %v485_v5, %v158_v27  ;;  %vm189_vm9 = vcmp.lt.s32.totalorder %v173_v30, 256 }
  0x23   : > { %v268_v41 = vadd.f32 %v267_v33, %v266_v35  ;;  %v271_v45 = vsel %vm263_vm4, %v250_v34, 0.0  ;;  %v252_v46 = vsel %vm188_vm8, %v204_v38, 0.0  ;;  %v161_v48 = vadd.s32 96, %v480_v2 }
  0x24   : > { %v176_v49 = vadd.s32 %v485_v5, %v159_v36  ;;  %vm190_vm10 = vcmp.lt.s32.totalorder %v174_v37, 256  ;;  %v273_v51 = vsel %vm263_vm4, %v251_v40, 0.0  ;;  %v253_v52 = vsel %vm189_vm9, %v205_v44, 0.0 }
  0x25   : > { %v270_v47 = vadd.f32 %v269_v39, %v268_v41  ;;  %v162_v54 = vadd.s32 104, %v480_v2  ;;  %v177_v55 = vadd.s32 %v485_v5, %v160_v42  ;;  %vm191_vm11 = vcmp.lt.s32.totalorder %v175_v43, 256  ;;  %v262_v39 = vld [vmem:[#allocation2] sm:$0x1] }
  0x26   : > { %v275_v57 = vsel %vm263_vm4, %v252_v46, 0.0  ;;  %v254_v58 = vsel %vm190_vm10, %v206_v50, 0.0  ;;  %v163_v60 = vadd.s32 112, %v480_v2  ;;  %v178_v61 = vadd.s32 %v485_v5, %v161_v48 }
  0x27   : > { %v272_v53 = vadd.f32 %v271_v45, %v270_v47  ;;  %vm192_vm12 = vcmp.lt.s32.totalorder %v176_v49, 256  ;;  %v277_v63 = vsel %vm263_vm4, %v253_v52, 0.0  ;;  %v255_v0 = vsel %vm191_vm11, %v207_v56, 0.0 }
  0x28   : > { %v164_v3 = vadd.s32 120, %v480_v2  ;;  %v179_v4 = vadd.s32 %v485_v5, %v162_v54  ;;  %vm193_vm13 = vcmp.lt.s32.totalorder %v177_v55, 256  ;;  %v279_v7 = vsel %vm263_vm4, %v254_v58, 0.0 }
  0x29   : > { %v274_v59 = vadd.f32 %v273_v51, %v272_v53  ;;  %v256_v8 = vsel %vm192_vm12, %v208_v62, 0.0  ;;  %v180_v10 = vadd.s32 %v485_v5, %v163_v60  ;;  %vm194_vm14 = vcmp.lt.s32.totalorder %v178_v61, 256 }
  0x2a   : > { %v281_v12 = vsel %vm263_vm4, %v255_v0, 0.0  ;;  %v257_v13 = vsel %vm193_vm13, %v209_v6, 0.0  ;;  %v181_v2 = vadd.s32 %v485_v5, %v164_v3  ;;  %vm195_vm15 = vcmp.lt.s32.totalorder %v179_v4, 256 }
  0x2b   : > { %v276_v1 = vadd.f32 %v275_v57, %v274_v59  ;;  %v283_v16 = vsel %vm263_vm4, %v256_v8, 0.0  ;;  %v258_v17 = vsel %vm194_vm14, %v210_v11, 0.0  ;;  %vm196_vm0 = vcmp.lt.s32.totalorder %v180_v10, 256 }
  0x2c   : > { %v285_v20 = vsel %vm263_vm4, %v257_v13, 0.0  ;;  %v259_v21 = vsel %vm195_vm15, %v211_v15, 0.0  ;;  %vm197_vm1 = vcmp.lt.s32.totalorder %v181_v2, 256  ;;  %v287_v24 = vsel %vm263_vm4, %v258_v17, 0.0 }
  0x2d   : > { %v278_v9 = vadd.f32 %v277_v63, %v276_v1  ;;  %v260_v25 = vsel %vm196_vm0, %v212_v19, 0.0  ;;  %v289_v5 = vsel %vm263_vm4, %v259_v21, 0.0  ;;  %v261_v27 = vsel %vm197_vm1, %v213_v23, 0.0 }
  0x2e   : > { %v291_v29 = vsel %vm263_vm4, %v260_v25, 0.0  ;;  %v293_v31 = vsel %vm263_vm4, %v261_v27, 0.0  ;;  %vm302_vm2 = vcmask 253952  }
  0x2f   : > { %v280_v14 = vadd.f32 %v279_v7, %v278_v9 }
  0x31   : > { %v282_v18 = vadd.f32 %v281_v12, %v280_v14 }
  0x33   : > { %v284_v22 = vadd.f32 %v283_v16, %v282_v18 }
  0x35   : > { %v286_v26 = vadd.f32 %v285_v20, %v284_v22 }
  0x37   : > { %v288_v28 = vadd.f32 %v287_v24, %v286_v26 }
  0x39   : > { %v290_v30 = vadd.f32 %v289_v5, %v288_v28 }
  0x3b   : > { %v292_v32 = vadd.f32 %v291_v29, %v290_v30 }
  0x3d   : > { %v294_v33 = vadd.f32 %v293_v31, %v292_v32 }
  0x3f   : > { %v295_v34 = vrot.slane %v294_v33, 4 }
  0x41   : > { %v296_v35 = vadd.f32 %v295_v34, %v294_v33 }
  0x43   : > { %v297_v36 = vrot.slane %v296_v35, 2 }
  0x45   : > { %v298_v37 = vadd.f32 %v297_v36, %v296_v35 }
  0x47   : > { %v299_v38 = vrot.slane %v298_v37, 1  ;;  %307 = sbr.rel (%p384_p6) target bundleno = 114 (0x72), region = 32 }
  0x49   : > { %v300_v40 = vadd.f32 %v299_v38, %v298_v37 }
  0x4b   : > { %v301_v41 = vadd.f32 %v300_v40, %v262_v39 }
  0x4d   : > { %303 = vst.msk [vmem:[#allocation2] sm:$0x1] %vm302_vm2, %v301_v41 }
  0x54   : > { %v308_v42 = vld [vmem:[#allocation2] sm:$0x1] }
  0x55   : > { %v385_v43 = vmul.f32 -0.00390625, %v308_v42 }
  0x57   : > { %v311_v44 = vmul.f32 1.442695, %v385_v43 }
  0x59   : > { %414 = vpow2.f32 %v311_v44 }
  0x63   : > { %v415_v45 = vpop.eup %414 }
  0x64   : > { %v313_v46 = vadd.f32 1.0, %v415_v45 }
  0x66   : > { %416 = vrcp.f32 %v313_v46 }
  0x70   : > { %v417_v47 = vpop.eup %416 }
  0x71   : > { %316 = vst.msk [vmem:[%s563_s1] sm:$0x1] %vm302_vm2, %v417_v47 }
  0x72 PF: > { %s11_s8 = sadd.s32 1, %s440_s8   ;;  %s564_s6 = smov %s436_s7 }
  0x73   : > { %p8_p7 = scmp.ge.s32.totalorder %s11_s8, 4   ;;  %s565_s7 = smov %s567_s9 }
  0x75   :  { %10 = sbr.rel (!%p8_p7) target bundleno = 2 (0x2), region = 62 }

</bundles_post_ra>
